<compile_context>
chip_gen: v7x
topology: tpu7x:2x2x1
jax: 0.10.0
libtpu: 0.0.40
codegen_flags: <defaults>
</compile_context>

<pallas_src>
import functools

import jax
import jax.numpy as jnp
from jax.experimental import pallas as pl
from jax.experimental.pallas import tpu as pltpu


# ---------------------------------------------------------------------------
# Fused SGPBlock kernel (one grid step = one batch element, full (C, T) slab).
# ---------------------------------------------------------------------------
def _sgp_block_kernel(x_ref, m_ref,
                      lnw_ref, lnb_ref,
                      wpsi_ref, bpsi_ref,
                      wfc_ref, bfc_ref,
                      wconv_ref, bconv_ref,
                      wgfc_ref, bgfc_ref,
                      gnw_ref, gnb_ref,
                      mg_ref, mgt_ref,
                      w1_ref, b1_ref,
                      w2_ref, b2_ref,
                      o_ref,
                      lnp_ref,
                      *, t_len, halo, inv_c, inv_gn, ln_eps, gn_eps):
    f32 = jnp.float32
    x = x_ref[0].astype(f32)                                    # (C, T)

    # ---- LayerNorm over channels (fused one-pass sum / sum-of-squares). ----
    # NOTE: E[x^2]-E[x]^2 variance with a >=0 clamp; fp32 is ample for
    # unit-scale activations (matches the two-pass torch form to ~1e-6).
    s1 = jnp.sum(x, axis=0, keepdims=True)                      # (1, T)
    s2 = jnp.sum(x * x, axis=0, keepdims=True)                  # (1, T)
    mu = s1 * inv_c
    var = jnp.maximum(s2 * inv_c - mu * mu, 0.0)
    inv = jax.lax.rsqrt(var + ln_eps)                           # EUP slot
    ln = (x - mu) * inv * lnw_ref[...].astype(f32) + lnb_ref[...].astype(f32)

    # ---- Zero-padded halo slab in VMEM (true Conv1d zero padding). ----
    lnp_ref[...] = jnp.zeros_like(lnp_ref)
    lnp_ref[:, halo:halo + t_len] = ln

    def dwconv(w_ref_, b_ref_):
        k = w_ref_.shape[1]
        w = w_ref_[...].astype(f32)                             # (C, k)
        start = halo - k // 2
        acc = jnp.zeros_like(ln)
        for j in range(k):                                      # static unroll
            acc = acc + w[:, j:j + 1] * lnp_ref[:, start + j:start + j + t_len]
        return acc + b_ref_[...].astype(f32)

    # (convw + convkw) was folded into one 7-tap conv on the host; psi is 3 taps.
    # Accumulate into a single buffer to keep live (C, T) temporaries low.
    out = dwconv(wconv_ref, bconv_ref) * dwconv(wpsi_ref, bpsi_ref)
    phi = jnp.maximum(
        wgfc_ref[...].astype(f32) * jnp.mean(ln, axis=1, keepdims=True)
        + bgfc_ref[...].astype(f32), 0.0)                       # (C, 1)
    out = out + (wfc_ref[...].astype(f32) * ln + bfc_ref[...].astype(f32)) * phi
    out = out + ln
    y = x * m_ref[0].astype(f32) + out                          # mixer output

    # ---- GroupNorm(16): T-first reductions, then tiny membership matmuls. ----
    sc1 = jnp.sum(y, axis=1, keepdims=True)                     # (C, 1)
    sc2 = jnp.sum(y * y, axis=1, keepdims=True)                 # (C, 1)
    mg = mg_ref[...]                                            # (G, C) 0/1
    gmu = jnp.dot(mg, sc1, preferred_element_type=f32) * inv_gn     # (G, 1)
    gm2 = jnp.dot(mg, sc2, preferred_element_type=f32) * inv_gn     # (G, 1)
    ginv = jax.lax.rsqrt(jnp.maximum(gm2 - gmu * gmu, 0.0) + gn_eps)
    mgt = mgt_ref[...]                                          # (C, G)
    mu_ch = jnp.dot(mgt, gmu, preferred_element_type=f32)       # (C, 1)
    inv_ch = jnp.dot(mgt, ginv, preferred_element_type=f32)     # (C, 1)
    yn = (y - mu_ch) * (inv_ch * gnw_ref[...].astype(f32)) + gnb_ref[...].astype(f32)

    # ---- MLP (1x1 -> GELU -> 1x1): bf16 MXU operands, f32 accumulation. ----
    h = jnp.dot(w1_ref[...].astype(jnp.bfloat16), yn.astype(jnp.bfloat16),
                preferred_element_type=f32) + b1_ref[...].astype(f32)
    h = jax.nn.gelu(h, approximate=True)   # TODO(synk): torch default is erf GELU
    o = jnp.dot(w2_ref[...].astype(jnp.bfloat16), h.astype(jnp.bfloat16),
                preferred_element_type=f32) + b2_ref[...].astype(f32)

    o_ref[0] = (y + o).astype(o_ref.dtype)


def _vmem_limit_bytes(need_bytes):
    try:
        phys = pltpu.get_tpu_info().vmem_capacity_bytes
    except Exception:
        phys = 64 << 20                      # v7x-safe fallback
    cap = min(int(phys * 0.85), 100 << 20)   # ~54 MiB on v7x, up to 100 MiB elsewhere
    return int(min(max(need_bytes, 32 << 20), cap))


def sgp_block_fused(x, mask_f, p, *, num_groups=16, ln_eps=1e-5, gn_eps=1e-5):
    B, C, T = x.shape
    H = p["w1"].shape[0]
    G = num_groups
    assert C % G == 0
    cg = C // G

    # Fold convw (k=3) into convkw (k=7): one merged 7-tap depthwise conv.
    ks, kw = p["w_cw"].shape[1], p["w_ckw"].shape[1]
    d = (kw - ks) // 2
    w_conv = p["w_ckw"] + jnp.pad(p["w_cw"], ((0, 0), (d, d)))
    b_conv = (p["b_cw"] + p["b_ckw"])[:, None]
    halo = max(kw, p["w_psi"].shape[1]) // 2

    # GroupNorm 0/1 membership matrices (contiguous channel groups).
    gidx = jnp.arange(C) // cg
    mg = (gidx[None, :] == jnp.arange(G)[:, None]).astype(jnp.float32)   # (G, C)
    mgt = mg.T                                                           # (C, G)

    weights = (
        p["ln_w"].reshape(C, 1), p["ln_b"].reshape(C, 1),
        p["w_psi"], p["b_psi"][:, None],
        p["w_fc"], p["b_fc"][:, None],
        w_conv, b_conv,
        p["w_gfc"], p["b_gfc"][:, None],
        p["gn_w"][:, None], p["gn_b"][:, None],
        mg, mgt,
        p["w1"], p["b1"][:, None],
        p["w2"], p["b2"][:, None],
    )

    kernel = functools.partial(
        _sgp_block_kernel, t_len=T, halo=halo, inv_c=1.0 / C,
        inv_gn=1.0 / (cg * T), ln_eps=ln_eps, gn_eps=gn_eps)

    itemsize = jnp.dtype(x.dtype).itemsize
    blk_bytes = (2 * 2 * C * T + 2 * T) * itemsize            # x/out + mask, 2x buffered
    wt_bytes = 2 * sum(int(w.size) for w in weights) * 4
    scratch_bytes = C * (T + 2 * halo) * 4
    work_bytes = (8 * C * T + 2 * H * T) * 4                   # f32 temporaries / spills
    vmem_limit = _vmem_limit_bytes(
        blk_bytes + wt_bytes + scratch_bytes + work_bytes + (8 << 20))

    in_specs = [
        pl.BlockSpec((1, C, T), lambda b: (b, 0, 0)),
        pl.BlockSpec((1, 1, T), lambda b: (b, 0, 0)),
    ] + [pl.BlockSpec(w.shape, lambda b: (0, 0)) for w in weights]

    return pl.pallas_call(
        kernel,
        out_shape=jax.ShapeDtypeStruct((B, C, T), x.dtype),
        grid_spec=pltpu.PrefetchScalarGridSpec(
            num_scalar_prefetch=0,
            grid=(B,),
            in_specs=in_specs,
            out_specs=pl.BlockSpec((1, C, T), lambda b: (b, 0, 0)),
            scratch_shapes=[pltpu.VMEM((C, T + 2 * halo), jnp.float32)],
        ),
        compiler_params=pltpu.CompilerParams(
            dimension_semantics=("parallel",),
            vmem_limit_bytes=vmem_limit,
        ),
        cost_estimate=pl.CostEstimate(
            flops=int(B * (52 * C * T + 4 * C * H * T + 12 * H * T)),
            transcendentals=int(B * (T + H * T + G)),
            bytes_accessed=int(B * (2 * C * T + T) * itemsize
                               + sum(int(w.size) for w in weights) * 4),
        ),
    )(x, mask_f, *weights)


# ---------------------------------------------------------------------------
# Full SGPBlock forward (default config: stride 1, path_pdrop 0).
# ---------------------------------------------------------------------------
def sgp_block_forward(x, mask_bool, params, *, num_groups=16, ln_eps=1e-5, gn_eps=1e-5):
    # stride == 1 -> downsample and nearest-interp of the mask are identities.
    out_mask = mask_bool.astype(x.dtype)
    out = sgp_block_fused(x, out_mask, params, num_groups=num_groups,
                          ln_eps=ln_eps, gn_eps=gn_eps)
    return out, mask_bool


# ---------------------------------------------------------------------------
# Pure-JAX reference matching the PyTorch module (same tanh GELU), f32 HIGHEST.
# ---------------------------------------------------------------------------
def sgp_block_ref(x, mask_bool, p, *, num_groups=16, ln_eps=1e-5, gn_eps=1e-5):
    B, C, T = x.shape
    out_mask = mask_bool.astype(x.dtype)

    mu = jnp.mean(x, axis=1, keepdims=True)
    res = x - mu
    sigma = jnp.mean(res ** 2, axis=1, keepdims=True)
    ln = res / jnp.sqrt(sigma + ln_eps) * p["ln_w"] + p["ln_b"]

    def dw(y, w, b):
        K = w.shape[1]
        pad = K // 2
        yp = jnp.pad(y, ((0, 0), (0, 0), (pad, pad)))
        out = jnp.zeros_like(y)
        for j in range(K):
            out = out + w[None, :, j:j + 1] * yp[:, :, j:j + T]
        return out + b[None, :, None]

    psi = dw(ln, p["w_psi"], p["b_psi"])
    cw = dw(ln, p["w_cw"], p["b_cw"])
    ckw = dw(ln, p["w_ckw"], p["b_ckw"])
    fc = p["w_fc"][None, :, :] * ln + p["b_fc"][None, :, None]
    phi = jax.nn.relu(p["w_gfc"][None, :, :] * jnp.mean(ln, axis=-1, keepdims=True)
                      + p["b_gfc"][None, :, None])

    out = fc * phi + (cw + ckw) * psi + ln
    out = x * out_mask + out

    cg = C // num_groups
    yg = out.reshape(B, num_groups, cg, T)
    gmu = jnp.mean(yg, axis=(2, 3), keepdims=True)
    gvar = jnp.mean((yg - gmu) ** 2, axis=(2, 3), keepdims=True)
    yn = ((yg - gmu) / jnp.sqrt(gvar + gn_eps)).reshape(B, C, T)
    yn = yn * p["gn_w"][None, :, None] + p["gn_b"][None, :, None]

    hp = jax.lax.Precision.HIGHEST
    h = jnp.einsum("hc,bct->bht", p["w1"], yn, precision=hp) + p["b1"][None, :, None]
    h = jax.nn.gelu(h, approximate=True)
    o = jnp.einsum("ch,bht->bct", p["w2"], h, precision=hp) + p["b2"][None, :, None]
    return out + o, mask_bool


if __name__ == "__main__":
    B, C, T = 2, 32, 96          # C must be divisible by 16 (GroupNorm(16, C))
    H = 4 * C
    key = jax.random.PRNGKey(0)
    keys = jax.random.split(key, 10)

    x = jax.random.normal(keys[0], (B, C, T), dtype=jnp.float32)
    lengths = jnp.array([T - 8 * i for i in range(B)])
    mask_bool = jnp.arange(T)[None, None, :] < lengths[:, None, None]   # (B, 1, T)

    params = dict(
        ln_w=jnp.ones((1, C, 1), jnp.float32),
        ln_b=jnp.zeros((1, C, 1), jnp.float32),
        # depthwise conv params (init_conv_vars=1 -> Normal(0, 1), zero bias)
        w_psi=jax.random.normal(keys[1], (C, 3), jnp.float32),
        b_psi=jnp.zeros((C,), jnp.float32),
        w_fc=jax.random.normal(keys[2], (C, 1), jnp.float32),
        b_fc=jnp.zeros((C,), jnp.float32),
        w_cw=jax.random.normal(keys[3], (C, 3), jnp.float32),
        b_cw=jnp.zeros((C,), jnp.float32),
        w_ckw=jax.random.normal(keys[4], (C, 7), jnp.float32),
        b_ckw=jnp.zeros((C,), jnp.float32),
        w_gfc=jax.random.normal(keys[5], (C, 1), jnp.float32),
        b_gfc=jnp.zeros((C,), jnp.float32),
        # GroupNorm affine
        gn_w=jnp.ones((C,), jnp.float32),
        gn_b=jnp.zeros((C,), jnp.float32),
        # MLP (1x1 convs)
        w1=jax.random.normal(keys[6], (H, C), jnp.float32) * (1.0 / C ** 0.5),
        b1=jnp.zeros((H,), jnp.float32),
        w2=jax.random.normal(keys[7], (C, H), jnp.float32) * (1.0 / H ** 0.5),
        b2=jnp.zeros((C,), jnp.float32),
    )

    out, out_mask = sgp_block_forward(x, mask_bool, params)
    out = jax.block_until_ready(out)

    ref_out, ref_mask = sgp_block_ref(x, mask_bool, params)
    assert out.shape == (B, C, T)
    err = float(jnp.max(jnp.abs(out - ref_out)))
    # 3e-2 tolerance: the MLP matmuls use bf16 MXU operands (f32 accumulation),
    # which adds ~1e-2 worst-case absolute error vs the f32 HIGHEST reference.
    assert jnp.allclose(out, ref_out, atol=3e-2, rtol=3e-2), f"mismatch vs ref: {err}"
    assert bool(jnp.array_equal(out_mask, ref_mask))

    print("KERNEL_OK")
</pallas_src>

<mosaic_0001>
module attributes {stable_mosaic.version = 11 : i64} {
  func.func @_sgp_block_kernel(%arg0: i32, %arg1: memref<1x32x96xf32, #tpu.memory_space<vmem>>, %arg2: memref<1x1x96xf32, #tpu.memory_space<vmem>>, %arg3: memref<32x1xf32, #tpu.memory_space<vmem>>, %arg4: memref<32x1xf32, #tpu.memory_space<vmem>>, %arg5: memref<32x3xf32, #tpu.memory_space<vmem>>, %arg6: memref<32x1xf32, #tpu.memory_space<vmem>>, %arg7: memref<32x1xf32, #tpu.memory_space<vmem>>, %arg8: memref<32x1xf32, #tpu.memory_space<vmem>>, %arg9: memref<32x7xf32, #tpu.memory_space<vmem>>, %arg10: memref<32x1xf32, #tpu.memory_space<vmem>>, %arg11: memref<32x1xf32, #tpu.memory_space<vmem>>, %arg12: memref<32x1xf32, #tpu.memory_space<vmem>>, %arg13: memref<32x1xf32, #tpu.memory_space<vmem>>, %arg14: memref<32x1xf32, #tpu.memory_space<vmem>>, %arg15: memref<16x32xf32, #tpu.memory_space<vmem>>, %arg16: memref<32x16xf32, #tpu.memory_space<vmem>>, %arg17: memref<128x32xf32, #tpu.memory_space<vmem>>, %arg18: memref<128x1xf32, #tpu.memory_space<vmem>>, %arg19: memref<32x128xf32, #tpu.memory_space<vmem>>, %arg20: memref<32x1xf32, #tpu.memory_space<vmem>>, %arg21: memref<1x32x96xf32, #tpu.memory_space<vmem>>, %arg22: memref<32x102xf32, #tpu.memory_space<vmem>>) attributes {dimension_semantics = [#tpu.dimension_semantics<parallel>], iteration_bounds = array<i64: 2>, scalar_prefetch = 0 : i64, scratch_operands = 1 : i64, tpu.core_type = #tpu.core_type<tc>, window_params = [{transform_indices = @transform_0, window_bounds = array<i64: 1, 32, 96>}, {transform_indices = @transform_1, window_bounds = array<i64: 1, 1, 96>}, {pipeline_mode = #tpu.pipeline_mode<synchronous>, transform_indices = @transform_2, window_bounds = array<i64: 32, 1>}, {pipeline_mode = #tpu.pipeline_mode<synchronous>, transform_indices = @transform_3, window_bounds = array<i64: 32, 1>}, {pipeline_mode = #tpu.pipeline_mode<synchronous>, transform_indices = @transform_4, window_bounds = array<i64: 32, 3>}, {pipeline_mode = #tpu.pipeline_mode<synchronous>, transform_indices = @transform_5, window_bounds = array<i64: 32, 1>}, {pipeline_mode = #tpu.pipeline_mode<synchronous>, transform_indices = @transform_6, window_bounds = array<i64: 32, 1>}, {pipeline_mode = #tpu.pipeline_mode<synchronous>, transform_indices = @transform_7, window_bounds = array<i64: 32, 1>}, {pipeline_mode = #tpu.pipeline_mode<synchronous>, transform_indices = @transform_8, window_bounds = array<i64: 32, 7>}, {pipeline_mode = #tpu.pipeline_mode<synchronous>, transform_indices = @transform_9, window_bounds = array<i64: 32, 1>}, {pipeline_mode = #tpu.pipeline_mode<synchronous>, transform_indices = @transform_10, window_bounds = array<i64: 32, 1>}, {pipeline_mode = #tpu.pipeline_mode<synchronous>, transform_indices = @transform_11, window_bounds = array<i64: 32, 1>}, {pipeline_mode = #tpu.pipeline_mode<synchronous>, transform_indices = @transform_12, window_bounds = array<i64: 32, 1>}, {pipeline_mode = #tpu.pipeline_mode<synchronous>, transform_indices = @transform_13, window_bounds = array<i64: 32, 1>}, {pipeline_mode = #tpu.pipeline_mode<synchronous>, transform_indices = @transform_14, window_bounds = array<i64: 16, 32>}, {pipeline_mode = #tpu.pipeline_mode<synchronous>, transform_indices = @transform_15, window_bounds = array<i64: 32, 16>}, {pipeline_mode = #tpu.pipeline_mode<synchronous>, transform_indices = @transform_16, window_bounds = array<i64: 128, 32>}, {pipeline_mode = #tpu.pipeline_mode<synchronous>, transform_indices = @transform_17, window_bounds = array<i64: 128, 1>}, {pipeline_mode = #tpu.pipeline_mode<synchronous>, transform_indices = @transform_18, window_bounds = array<i64: 32, 128>}, {pipeline_mode = #tpu.pipeline_mode<synchronous>, transform_indices = @transform_19, window_bounds = array<i64: 32, 1>}, {transform_indices = @transform_20, window_bounds = array<i64: 1, 32, 96>}]} {
    %c0 = arith.constant 0 : index
    %c0_0 = arith.constant 0 : index
    %c0_1 = arith.constant 0 : index
    %0 = vector.load %arg1[%c0, %c0_0, %c0_1] : memref<1x32x96xf32, #tpu.memory_space<vmem>>, vector<1x32x96xf32>
    %1 = vector.shape_cast %0 : vector<1x32x96xf32> to vector<32x96xf32>
    %cst = arith.constant dense<0.000000e+00> : vector<96xf32>
    %2 = vector.multi_reduction <add>, %1, %cst [0] : vector<32x96xf32> to vector<96xf32>
    %3 = vector.shape_cast %2 : vector<96xf32> to vector<1x96xf32>
    %4 = arith.mulf %1, %1 : vector<32x96xf32>
    %cst_2 = arith.constant dense<0.000000e+00> : vector<96xf32>
    %5 = vector.multi_reduction <add>, %4, %cst_2 [0] : vector<32x96xf32> to vector<96xf32>
    %6 = vector.shape_cast %5 : vector<96xf32> to vector<1x96xf32>
    %cst_3 = arith.constant 3.125000e-02 : f32
    %7 = vector.broadcast %cst_3 : f32 to vector<1x96xf32>
    %8 = arith.mulf %3, %7 : vector<1x96xf32>
    %cst_4 = arith.constant 3.125000e-02 : f32
    %9 = vector.broadcast %cst_4 : f32 to vector<1x96xf32>
    %10 = arith.mulf %6, %9 : vector<1x96xf32>
    %11 = arith.mulf %8, %8 : vector<1x96xf32>
    %12 = arith.subf %10, %11 : vector<1x96xf32>
    %cst_5 = arith.constant 0.000000e+00 : f32
    %13 = vector.broadcast %cst_5 : f32 to vector<1x96xf32>
    %14 = arith.maximumf %12, %13 : vector<1x96xf32>
    %cst_6 = arith.constant 9.99999974E-6 : f32
    %15 = vector.broadcast %cst_6 : f32 to vector<1x96xf32>
    %16 = arith.addf %14, %15 : vector<1x96xf32>
    %17 = math.rsqrt %16 : vector<1x96xf32>
    %18 = vector.broadcast %8 : vector<1x96xf32> to vector<32x96xf32>
    %19 = arith.subf %1, %18 : vector<32x96xf32>
    %20 = vector.broadcast %17 : vector<1x96xf32> to vector<32x96xf32>
    %21 = arith.mulf %19, %20 : vector<32x96xf32>
    %c0_7 = arith.constant 0 : index
    %c0_8 = arith.constant 0 : index
    %22 = vector.load %arg3[%c0_7, %c0_8] : memref<32x1xf32, #tpu.memory_space<vmem>>, vector<32x1xf32>
    %23 = vector.broadcast %22 : vector<32x1xf32> to vector<32x96xf32>
    %24 = arith.mulf %21, %23 : vector<32x96xf32>
    %c0_9 = arith.constant 0 : index
    %c0_10 = arith.constant 0 : index
    %25 = vector.load %arg4[%c0_9, %c0_10] : memref<32x1xf32, #tpu.memory_space<vmem>>, vector<32x1xf32>
    %26 = vector.broadcast %25 : vector<32x1xf32> to vector<32x96xf32>
    %27 = arith.addf %24, %26 : vector<32x96xf32>
    %cst_11 = arith.constant 0.000000e+00 : f32
    %28 = vector.broadcast %cst_11 : f32 to vector<32x102xf32>
    %c0_12 = arith.constant 0 : index
    %c0_13 = arith.constant 0 : index
    %29 = vector.load %arg22[%c0_12, %c0_13] : memref<32x102xf32, #tpu.memory_space<vmem>>, vector<32x102xf32>
    tpu.vector_store %arg22[%c0_12, %c0_13], %28 {strides = array<i32>} : memref<32x102xf32, #tpu.memory_space<vmem>>, vector<32x102xf32>,
    %c0_14 = arith.constant 0 : index
    %c3 = arith.constant 3 : index
    %30 = vector.load %arg22[%c0_14, %c3] : memref<32x102xf32, #tpu.memory_space<vmem>>, vector<32x96xf32>
    tpu.vector_store %arg22[%c0_14, %c3], %27 {strides = array<i32>} : memref<32x102xf32, #tpu.memory_space<vmem>>, vector<32x96xf32>,
    %c0_15 = arith.constant 0 : index
    %c0_16 = arith.constant 0 : index
    %31 = vector.load %arg9[%c0_15, %c0_16] : memref<32x7xf32, #tpu.memory_space<vmem>>, vector<32x7xf32>
    %cst_17 = arith.constant 0.000000e+00 : f32
    %32 = vector.broadcast %cst_17 : f32 to vector<32x96xf32>
    %33 = vector.extract_strided_slice %31 {offsets = [0, 0], sizes = [32, 1], strides = [1, 1]} : vector<32x7xf32> to vector<32x1xf32>
    %c0_18 = arith.constant 0 : index
    %c0_19 = arith.constant 0 : index
    %34 = vector.load %arg22[%c0_18, %c0_19] : memref<32x102xf32, #tpu.memory_space<vmem>>, vector<32x96xf32>
    %35 = vector.broadcast %33 : vector<32x1xf32> to vector<32x96xf32>
    %36 = arith.mulf %35, %34 : vector<32x96xf32>
    %37 = arith.addf %32, %36 : vector<32x96xf32>
    %38 = vector.extract_strided_slice %31 {offsets = [0, 1], sizes = [32, 1], strides = [1, 1]} : vector<32x7xf32> to vector<32x1xf32>
    %c0_20 = arith.constant 0 : index
    %c1 = arith.constant 1 : index
    %39 = vector.load %arg22[%c0_20, %c1] : memref<32x102xf32, #tpu.memory_space<vmem>>, vector<32x96xf32>
    %40 = vector.broadcast %38 : vector<32x1xf32> to vector<32x96xf32>
    %41 = arith.mulf %40, %39 : vector<32x96xf32>
    %42 = arith.addf %37, %41 : vector<32x96xf32>
    %43 = vector.extract_strided_slice %31 {offsets = [0, 2], sizes = [32, 1], strides = [1, 1]} : vector<32x7xf32> to vector<32x1xf32>
    %c0_21 = arith.constant 0 : index
    %c2 = arith.constant 2 : index
    %44 = vector.load %arg22[%c0_21, %c2] : memref<32x102xf32, #tpu.memory_space<vmem>>, vector<32x96xf32>
    %45 = vector.broadcast %43 : vector<32x1xf32> to vector<32x96xf32>
    %46 = arith.mulf %45, %44 : vector<32x96xf32>
    %47 = arith.addf %42, %46 : vector<32x96xf32>
    %48 = vector.extract_strided_slice %31 {offsets = [0, 3], sizes = [32, 1], strides = [1, 1]} : vector<32x7xf32> to vector<32x1xf32>
    %c0_22 = arith.constant 0 : index
    %c3_23 = arith.constant 3 : index
    %49 = vector.load %arg22[%c0_22, %c3_23] : memref<32x102xf32, #tpu.memory_space<vmem>>, vector<32x96xf32>
    %50 = vector.broadcast %48 : vector<32x1xf32> to vector<32x96xf32>
    %51 = arith.mulf %50, %49 : vector<32x96xf32>
    %52 = arith.addf %47, %51 : vector<32x96xf32>
    %53 = vector.extract_strided_slice %31 {offsets = [0, 4], sizes = [32, 1], strides = [1, 1]} : vector<32x7xf32> to vector<32x1xf32>
    %c0_24 = arith.constant 0 : index
    %c4 = arith.constant 4 : index
    %54 = vector.load %arg22[%c0_24, %c4] : memref<32x102xf32, #tpu.memory_space<vmem>>, vector<32x96xf32>
    %55 = vector.broadcast %53 : vector<32x1xf32> to vector<32x96xf32>
    %56 = arith.mulf %55, %54 : vector<32x96xf32>
    %57 = arith.addf %52, %56 : vector<32x96xf32>
    %58 = vector.extract_strided_slice %31 {offsets = [0, 5], sizes = [32, 1], strides = [1, 1]} : vector<32x7xf32> to vector<32x1xf32>
    %c0_25 = arith.constant 0 : index
    %c5 = arith.constant 5 : index
    %59 = vector.load %arg22[%c0_25, %c5] : memref<32x102xf32, #tpu.memory_space<vmem>>, vector<32x96xf32>
    %60 = vector.broadcast %58 : vector<32x1xf32> to vector<32x96xf32>
    %61 = arith.mulf %60, %59 : vector<32x96xf32>
    %62 = arith.addf %57, %61 : vector<32x96xf32>
    %63 = vector.extract_strided_slice %31 {offsets = [0, 6], sizes = [32, 1], strides = [1, 1]} : vector<32x7xf32> to vector<32x1xf32>
    %c0_26 = arith.constant 0 : index
    %c6 = arith.constant 6 : index
    %64 = vector.load %arg22[%c0_26, %c6] : memref<32x102xf32, #tpu.memory_space<vmem>>, vector<32x96xf32>
    %65 = vector.broadcast %63 : vector<32x1xf32> to vector<32x96xf32>
    %66 = arith.mulf %65, %64 : vector<32x96xf32>
    %67 = arith.addf %62, %66 : vector<32x96xf32>
    %c0_27 = arith.constant 0 : index
    %c0_28 = arith.constant 0 : index
    %68 = vector.load %arg10[%c0_27, %c0_28] : memref<32x1xf32, #tpu.memory_space<vmem>>, vector<32x1xf32>
    %69 = vector.broadcast %68 : vector<32x1xf32> to vector<32x96xf32>
    %70 = arith.addf %67, %69 : vector<32x96xf32>
    %c0_29 = arith.constant 0 : index
    %c0_30 = arith.constant 0 : index
    %71 = vector.load %arg5[%c0_29, %c0_30] : memref<32x3xf32, #tpu.memory_space<vmem>>, vector<32x3xf32>
    %cst_31 = arith.constant 0.000000e+00 : f32
    %72 = vector.broadcast %cst_31 : f32 to vector<32x96xf32>
    %73 = vector.extract_strided_slice %71 {offsets = [0, 0], sizes = [32, 1], strides = [1, 1]} : vector<32x3xf32> to vector<32x1xf32>
    %c0_32 = arith.constant 0 : index
    %c2_33 = arith.constant 2 : index
    %74 = vector.load %arg22[%c0_32, %c2_33] : memref<32x102xf32, #tpu.memory_space<vmem>>, vector<32x96xf32>
    %75 = vector.broadcast %73 : vector<32x1xf32> to vector<32x96xf32>
    %76 = arith.mulf %75, %74 : vector<32x96xf32>
    %77 = arith.addf %72, %76 : vector<32x96xf32>
    %78 = vector.extract_strided_slice %71 {offsets = [0, 1], sizes = [32, 1], strides = [1, 1]} : vector<32x3xf32> to vector<32x1xf32>
    %c0_34 = arith.constant 0 : index
    %c3_35 = arith.constant 3 : index
    %79 = vector.load %arg22[%c0_34, %c3_35] : memref<32x102xf32, #tpu.memory_space<vmem>>, vector<32x96xf32>
    %80 = vector.broadcast %78 : vector<32x1xf32> to vector<32x96xf32>
    %81 = arith.mulf %80, %79 : vector<32x96xf32>
    %82 = arith.addf %77, %81 : vector<32x96xf32>
    %83 = vector.extract_strided_slice %71 {offsets = [0, 2], sizes = [32, 1], strides = [1, 1]} : vector<32x3xf32> to vector<32x1xf32>
    %c0_36 = arith.constant 0 : index
    %c4_37 = arith.constant 4 : index
    %84 = vector.load %arg22[%c0_36, %c4_37] : memref<32x102xf32, #tpu.memory_space<vmem>>, vector<32x96xf32>
    %85 = vector.broadcast %83 : vector<32x1xf32> to vector<32x96xf32>
    %86 = arith.mulf %85, %84 : vector<32x96xf32>
    %87 = arith.addf %82, %86 : vector<32x96xf32>
    %c0_38 = arith.constant 0 : index
    %c0_39 = arith.constant 0 : index
    %88 = vector.load %arg6[%c0_38, %c0_39] : memref<32x1xf32, #tpu.memory_space<vmem>>, vector<32x1xf32>
    %89 = vector.broadcast %88 : vector<32x1xf32> to vector<32x96xf32>
    %90 = arith.addf %87, %89 : vector<32x96xf32>
    %91 = arith.mulf %70, %90 : vector<32x96xf32>
    %c0_40 = arith.constant 0 : index
    %c0_41 = arith.constant 0 : index
    %92 = vector.load %arg11[%c0_40, %c0_41] : memref<32x1xf32, #tpu.memory_space<vmem>>, vector<32x1xf32>
    %cst_42 = arith.constant dense<0.000000e+00> : vector<32xf32>
    %93 = vector.multi_reduction <add>, %27, %cst_42 [1] : vector<32x96xf32> to vector<32xf32>
    %94 = vector.shape_cast %93 : vector<32xf32> to vector<32x1xf32>
    %cst_43 = arith.constant 9.600000e+01 : f32
    %95 = vector.broadcast %cst_43 : f32 to vector<32x1xf32>
    %96 = arith.divf %94, %95 : vector<32x1xf32>
    %97 = arith.mulf %92, %96 : vector<32x1xf32>
    %c0_44 = arith.constant 0 : index
    %c0_45 = arith.constant 0 : index
    %98 = vector.load %arg12[%c0_44, %c0_45] : memref<32x1xf32, #tpu.memory_space<vmem>>, vector<32x1xf32>
    %99 = arith.addf %97, %98 : vector<32x1xf32>
    %cst_46 = arith.constant 0.000000e+00 : f32
    %100 = vector.broadcast %cst_46 : f32 to vector<32x1xf32>
    %101 = arith.maximumf %99, %100 : vector<32x1xf32>
    %c0_47 = arith.constant 0 : index
    %c0_48 = arith.constant 0 : index
    %102 = vector.load %arg7[%c0_47, %c0_48] : memref<32x1xf32, #tpu.memory_space<vmem>>, vector<32x1xf32>
    %103 = vector.broadcast %102 : vector<32x1xf32> to vector<32x96xf32>
    %104 = arith.mulf %103, %27 : vector<32x96xf32>
    %c0_49 = arith.constant 0 : index
    %c0_50 = arith.constant 0 : index
    %105 = vector.load %arg8[%c0_49, %c0_50] : memref<32x1xf32, #tpu.memory_space<vmem>>, vector<32x1xf32>
    %106 = vector.broadcast %105 : vector<32x1xf32> to vector<32x96xf32>
    %107 = arith.addf %104, %106 : vector<32x96xf32>
    %108 = vector.broadcast %101 : vector<32x1xf32> to vector<32x96xf32>
    %109 = arith.mulf %107, %108 : vector<32x96xf32>
    %110 = arith.addf %91, %109 : vector<32x96xf32>
    %111 = arith.addf %110, %27 : vector<32x96xf32>
    %c0_51 = arith.constant 0 : index
    %c0_52 = arith.constant 0 : index
    %c0_53 = arith.constant 0 : index
    %112 = vector.load %arg2[%c0_51, %c0_52, %c0_53] : memref<1x1x96xf32, #tpu.memory_space<vmem>>, vector<1x1x96xf32>
    %113 = vector.shape_cast %112 : vector<1x1x96xf32> to vector<1x96xf32>
    %114 = vector.broadcast %113 : vector<1x96xf32> to vector<32x96xf32>
    %115 = arith.mulf %1, %114 : vector<32x96xf32>
    %116 = arith.addf %115, %111 : vector<32x96xf32>
    %cst_54 = arith.constant dense<0.000000e+00> : vector<32xf32>
    %117 = vector.multi_reduction <add>, %116, %cst_54 [1] : vector<32x96xf32> to vector<32xf32>
    %118 = vector.shape_cast %117 : vector<32xf32> to vector<32x1xf32>
    %119 = arith.mulf %116, %116 : vector<32x96xf32>
    %cst_55 = arith.constant dense<0.000000e+00> : vector<32xf32>
    %120 = vector.multi_reduction <add>, %119, %cst_55 [1] : vector<32x96xf32> to vector<32xf32>
    %121 = vector.shape_cast %120 : vector<32xf32> to vector<32x1xf32>
    %c0_56 = arith.constant 0 : index
    %c0_57 = arith.constant 0 : index
    %122 = vector.load %arg15[%c0_56, %c0_57] : memref<16x32xf32, #tpu.memory_space<vmem>>, vector<16x32xf32>
    %cst_58 = arith.constant dense<0.000000e+00> : vector<16x1xf32>
    %123 = tpu.matmul %122, %118, %cst_58 {dimension_numbers = #tpu.dot_dimension_numbers<[1], [0], [0], [1], [0, 0, 1, 1], [], []>} : vector<16x32xf32>, vector<32x1xf32>, vector<16x1xf32> -> vector<16x1xf32>
    %cst_59 = arith.constant 0.00520833349 : f32
    %124 = vector.broadcast %cst_59 : f32 to vector<16x1xf32>
    %125 = arith.mulf %123, %124 : vector<16x1xf32>
    %cst_60 = arith.constant dense<0.000000e+00> : vector<16x1xf32>
    %126 = tpu.matmul %122, %121, %cst_60 {dimension_numbers = #tpu.dot_dimension_numbers<[1], [0], [0], [1], [0, 0, 1, 1], [], []>} : vector<16x32xf32>, vector<32x1xf32>, vector<16x1xf32> -> vector<16x1xf32>
    %cst_61 = arith.constant 0.00520833349 : f32
    %127 = vector.broadcast %cst_61 : f32 to vector<16x1xf32>
    %128 = arith.mulf %126, %127 : vector<16x1xf32>
    %129 = arith.mulf %125, %125 : vector<16x1xf32>
    %130 = arith.subf %128, %129 : vector<16x1xf32>
    %cst_62 = arith.constant 0.000000e+00 : f32
    %131 = vector.broadcast %cst_62 : f32 to vector<16x1xf32>
    %132 = arith.maximumf %130, %131 : vector<16x1xf32>
    %cst_63 = arith.constant 9.99999974E-6 : f32
    %133 = vector.broadcast %cst_63 : f32 to vector<16x1xf32>
    %134 = arith.addf %132, %133 : vector<16x1xf32>
    %135 = math.rsqrt %134 : vector<16x1xf32>
    %c0_64 = arith.constant 0 : index
    %c0_65 = arith.constant 0 : index
    %136 = vector.load %arg16[%c0_64, %c0_65] : memref<32x16xf32, #tpu.memory_space<vmem>>, vector<32x16xf32>
    %cst_66 = arith.constant dense<0.000000e+00> : vector<32x1xf32>
    %137 = tpu.matmul %136, %125, %cst_66 {dimension_numbers = #tpu.dot_dimension_numbers<[1], [0], [0], [1], [0, 0, 1, 1], [], []>} : vector<32x16xf32>, vector<16x1xf32>, vector<32x1xf32> -> vector<32x1xf32>
    %cst_67 = arith.constant dense<0.000000e+00> : vector<32x1xf32>
    %138 = tpu.matmul %136, %135, %cst_67 {dimension_numbers = #tpu.dot_dimension_numbers<[1], [0], [0], [1], [0, 0, 1, 1], [], []>} : vector<32x16xf32>, vector<16x1xf32>, vector<32x1xf32> -> vector<32x1xf32>
    %139 = vector.broadcast %137 : vector<32x1xf32> to vector<32x96xf32>
    %140 = arith.subf %116, %139 : vector<32x96xf32>
    %c0_68 = arith.constant 0 : index
    %c0_69 = arith.constant 0 : index
    %141 = vector.load %arg13[%c0_68, %c0_69] : memref<32x1xf32, #tpu.memory_space<vmem>>, vector<32x1xf32>
    %142 = arith.mulf %138, %141 : vector<32x1xf32>
    %143 = vector.broadcast %142 : vector<32x1xf32> to vector<32x96xf32>
    %144 = arith.mulf %140, %143 : vector<32x96xf32>
    %c0_70 = arith.constant 0 : index
    %c0_71 = arith.constant 0 : index
    %145 = vector.load %arg14[%c0_70, %c0_71] : memref<32x1xf32, #tpu.memory_space<vmem>>, vector<32x1xf32>
    %146 = vector.broadcast %145 : vector<32x1xf32> to vector<32x96xf32>
    %147 = arith.addf %144, %146 : vector<32x96xf32>
    %c0_72 = arith.constant 0 : index
    %c0_73 = arith.constant 0 : index
    %148 = vector.load %arg17[%c0_72, %c0_73] : memref<128x32xf32, #tpu.memory_space<vmem>>, vector<128x32xf32>
    %149 = arith.truncf %148 : vector<128x32xf32> to vector<128x32xbf16>
    %150 = arith.truncf %147 : vector<32x96xf32> to vector<32x96xbf16>
    %cst_74 = arith.constant dense<0.000000e+00> : vector<128x96xf32>
    %151 = tpu.matmul %149, %150, %cst_74 {dimension_numbers = #tpu.dot_dimension_numbers<[1], [0], [0], [1], [0, 0, 1, 1], [], []>} : vector<128x32xbf16>, vector<32x96xbf16>, vector<128x96xf32> -> vector<128x96xf32>
    %c0_75 = arith.constant 0 : index
    %c0_76 = arith.constant 0 : index
    %152 = vector.load %arg18[%c0_75, %c0_76] : memref<128x1xf32, #tpu.memory_space<vmem>>, vector<128x1xf32>
    %153 = vector.broadcast %152 : vector<128x1xf32> to vector<128x96xf32>
    %154 = arith.addf %151, %153 : vector<128x96xf32>
    %155 = arith.mulf %154, %154 : vector<128x96xf32>
    %156 = arith.mulf %154, %155 : vector<128x96xf32>
    %cst_77 = arith.constant 4.471500e-02 : f32
    %157 = vector.broadcast %cst_77 : f32 to vector<128x96xf32>
    %158 = arith.mulf %157, %156 : vector<128x96xf32>
    %159 = arith.addf %154, %158 : vector<128x96xf32>
    %cst_78 = arith.constant 0.797884583 : f32
    %160 = vector.broadcast %cst_78 : f32 to vector<128x96xf32>
    %161 = arith.mulf %160, %159 : vector<128x96xf32>
    %162 = math.tanh %161 : vector<128x96xf32>
    %cst_79 = arith.constant 1.000000e+00 : f32
    %163 = vector.broadcast %cst_79 : f32 to vector<128x96xf32>
    %164 = arith.addf %163, %162 : vector<128x96xf32>
    %cst_80 = arith.constant 5.000000e-01 : f32
    %165 = vector.broadcast %cst_80 : f32 to vector<128x96xf32>
    %166 = arith.mulf %165, %164 : vector<128x96xf32>
    %167 = arith.mulf %154, %166 : vector<128x96xf32>
    %c0_81 = arith.constant 0 : index
    %c0_82 = arith.constant 0 : index
    %168 = vector.load %arg19[%c0_81, %c0_82] : memref<32x128xf32, #tpu.memory_space<vmem>>, vector<32x128xf32>
    %169 = arith.truncf %168 : vector<32x128xf32> to vector<32x128xbf16>
    %170 = arith.truncf %167 : vector<128x96xf32> to vector<128x96xbf16>
    %cst_83 = arith.constant dense<0.000000e+00> : vector<32x96xf32>
    %171 = tpu.matmul %169, %170, %cst_83 {dimension_numbers = #tpu.dot_dimension_numbers<[1], [0], [0], [1], [0, 0, 1, 1], [], []>} : vector<32x128xbf16>, vector<128x96xbf16>, vector<32x96xf32> -> vector<32x96xf32>
    %c0_84 = arith.constant 0 : index
    %c0_85 = arith.constant 0 : index
    %172 = vector.load %arg20[%c0_84, %c0_85] : memref<32x1xf32, #tpu.memory_space<vmem>>, vector<32x1xf32>
    %173 = vector.broadcast %172 : vector<32x1xf32> to vector<32x96xf32>
    %174 = arith.addf %171, %173 : vector<32x96xf32>
    %175 = arith.addf %116, %174 : vector<32x96xf32>
    %c0_86 = arith.constant 0 : index
    %c0_87 = arith.constant 0 : index
    %c0_88 = arith.constant 0 : index
    %176 = vector.load %arg21[%c0_86, %c0_87, %c0_88] : memref<1x32x96xf32, #tpu.memory_space<vmem>>, vector<1x32x96xf32>
    %177 = vector.shape_cast %176 : vector<1x32x96xf32> to vector<32x96xf32>
    %178 = vector.shape_cast %175 : vector<32x96xf32> to vector<1x32x96xf32>
    tpu.vector_store %arg21[%c0_86, %c0_87, %c0_88], %178 {strides = array<i32>} : memref<1x32x96xf32, #tpu.memory_space<vmem>>, vector<1x32x96xf32>,
    return
  }
  func.func @transform_0(%arg0: i32) -> (i32, i32, i32) {
    %c0_i32 = arith.constant 0 : i32
    %c0_i32_0 = arith.constant 0 : i32
    %c0_i32_1 = arith.constant 0 : i32
    return %arg0, %c0_i32, %c0_i32_0 : i32, i32, i32
  }
  func.func @transform_1(%arg0: i32) -> (i32, i32, i32) {
    %c0_i32 = arith.constant 0 : i32
    %c0_i32_0 = arith.constant 0 : i32
    %c0_i32_1 = arith.constant 0 : i32
    return %arg0, %c0_i32, %c0_i32_0 : i32, i32, i32
  }
  func.func @transform_2(%arg0: i32) -> (i32, i32) {
    %c0_i32 = arith.constant 0 : i32
    %c0_i32_0 = arith.constant 0 : i32
    %c0_i32_1 = arith.constant 0 : i32
    return %c0_i32, %c0_i32_0 : i32, i32
  }
  func.func @transform_3(%arg0: i32) -> (i32, i32) {
    %c0_i32 = arith.constant 0 : i32
    %c0_i32_0 = arith.constant 0 : i32
    %c0_i32_1 = arith.constant 0 : i32
    return %c0_i32, %c0_i32_0 : i32, i32
  }
  func.func @transform_4(%arg0: i32) -> (i32, i32) {
    %c0_i32 = arith.constant 0 : i32
    %c0_i32_0 = arith.constant 0 : i32
    %c0_i32_1 = arith.constant 0 : i32
    return %c0_i32, %c0_i32_0 : i32, i32
  }
  func.func @transform_5(%arg0: i32) -> (i32, i32) {
    %c0_i32 = arith.constant 0 : i32
    %c0_i32_0 = arith.constant 0 : i32
    %c0_i32_1 = arith.constant 0 : i32
    return %c0_i32, %c0_i32_0 : i32, i32
  }
  func.func @transform_6(%arg0: i32) -> (i32, i32) {
    %c0_i32 = arith.constant 0 : i32
    %c0_i32_0 = arith.constant 0 : i32
    %c0_i32_1 = arith.constant 0 : i32
    return %c0_i32, %c0_i32_0 : i32, i32
  }
  func.func @transform_7(%arg0: i32) -> (i32, i32) {
    %c0_i32 = arith.constant 0 : i32
    %c0_i32_0 = arith.constant 0 : i32
    %c0_i32_1 = arith.constant 0 : i32
    return %c0_i32, %c0_i32_0 : i32, i32
  }
  func.func @transform_8(%arg0: i32) -> (i32, i32) {
    %c0_i32 = arith.constant 0 : i32
    %c0_i32_0 = arith.constant 0 : i32
    %c0_i32_1 = arith.constant 0 : i32
    return %c0_i32, %c0_i32_0 : i32, i32
  }
  func.func @transform_9(%arg0: i32) -> (i32, i32) {
    %c0_i32 = arith.constant 0 : i32
    %c0_i32_0 = arith.constant 0 : i32
    %c0_i32_1 = arith.constant 0 : i32
    return %c0_i32, %c0_i32_0 : i32, i32
  }
  func.func @transform_10(%arg0: i32) -> (i32, i32) {
    %c0_i32 = arith.constant 0 : i32
    %c0_i32_0 = arith.constant 0 : i32
    %c0_i32_1 = arith.constant 0 : i32
    return %c0_i32, %c0_i32_0 : i32, i32
  }
  func.func @transform_11(%arg0: i32) -> (i32, i32) {
    %c0_i32 = arith.constant 0 : i32
    %c0_i32_0 = arith.constant 0 : i32
    %c0_i32_1 = arith.constant 0 : i32
    return %c0_i32, %c0_i32_0 : i32, i32
  }
  func.func @transform_12(%arg0: i32) -> (i32, i32) {
    %c0_i32 = arith.constant 0 : i32
    %c0_i32_0 = arith.constant 0 : i32
    %c0_i32_1 = arith.constant 0 : i32
    return %c0_i32, %c0_i32_0 : i32, i32
  }
  func.func @transform_13(%arg0: i32) -> (i32, i32) {
    %c0_i32 = arith.constant 0 : i32
    %c0_i32_0 = arith.constant 0 : i32
    %c0_i32_1 = arith.constant 0 : i32
    return %c0_i32, %c0_i32_0 : i32, i32
  }
  func.func @transform_14(%arg0: i32) -> (i32, i32) {
    %c0_i32 = arith.constant 0 : i32
    %c0_i32_0 = arith.constant 0 : i32
    %c0_i32_1 = arith.constant 0 : i32
    return %c0_i32, %c0_i32_0 : i32, i32
  }
  func.func @transform_15(%arg0: i32) -> (i32, i32) {
    %c0_i32 = arith.constant 0 : i32
    %c0_i32_0 = arith.constant 0 : i32
    %c0_i32_1 = arith.constant 0 : i32
    return %c0_i32, %c0_i32_0 : i32, i32
  }
  func.func @transform_16(%arg0: i32) -> (i32, i32) {
    %c0_i32 = arith.constant 0 : i32
    %c0_i32_0 = arith.constant 0 : i32
    %c0_i32_1 = arith.constant 0 : i32
    return %c0_i32, %c0_i32_0 : i32, i32
  }
  func.func @transform_17(%arg0: i32) -> (i32, i32) {
    %c0_i32 = arith.constant 0 : i32
    %c0_i32_0 = arith.constant 0 : i32
    %c0_i32_1 = arith.constant 0 : i32
    return %c0_i32, %c0_i32_0 : i32, i32
  }
  func.func @transform_18(%arg0: i32) -> (i32, i32) {
    %c0_i32 = arith.constant 0 : i32
    %c0_i32_0 = arith.constant 0 : i32
    %c0_i32_1 = arith.constant 0 : i32
    return %c0_i32, %c0_i32_0 : i32, i32
  }
  func.func @transform_19(%arg0: i32) -> (i32, i32) {
    %c0_i32 = arith.constant 0 : i32
    %c0_i32_0 = arith.constant 0 : i32
    %c0_i32_1 = arith.constant 0 : i32
    return %c0_i32, %c0_i32_0 : i32, i32
  }
  func.func @transform_20(%arg0: i32) -> (i32, i32, i32) {
    %c0_i32 = arith.constant 0 : i32
    %c0_i32_0 = arith.constant 0 : i32
    %c0_i32_1 = arith.constant 0 : i32
    return %arg0, %c0_i32, %c0_i32_0 : i32, i32, i32
  }
}

</mosaic_0001>

<bundles_post_ra>
// kernel: tpu_custom_call.1
= control target key start
LH: loop header
LB: loop body
LE: loop exit
PB: predicated region body
PF: predicated region fallthrough
CT: control target
= control target key end

     0   :  { %s3799_s0 = inlined_call_operand.vmem [shape: f32[2,32,96], index: 0, kind: input, shape index: {}]   ;;  %s3800_s1 = inlined_call_operand.vmem [shape: f32[2,1,96], index: 1, kind: input, shape index: {}]   ;;  %s3801_s2 = inlined_call_operand.vmem [shape: f32[32,1], index: 2, kind: input, shape index: {}]   ;;  %s3802_s3 = inlined_call_operand.vmem [shape: f32[32,1], index: 3, kind: input, shape index: {}]   ;;  %s3803_s4 = inlined_call_operand.vmem [shape: f32[32,3], index: 4, kind: input, shape index: {}]   ;;  %s3804_s5 = inlined_call_operand.vmem [shape: f32[32,1], index: 5, kind: input, shape index: {}]   ;;  %s3805_s6 = inlined_call_operand.vmem [shape: f32[32,1], index: 6, kind: input, shape index: {}]   ;;  %s3806_s7 = inlined_call_operand.vmem [shape: f32[32,1], index: 7, kind: input, shape index: {}]   ;;  %s3807_s8 = inlined_call_operand.vmem [shape: f32[32,7], index: 8, kind: input, shape index: {}]   ;;  %s3808_s9 = inlined_call_operand.vmem [shape: f32[32,1], index: 9, kind: input, shape index: {}]   ;;  %s3809_s10 = inlined_call_operand.vmem [shape: f32[32,1], index: 10, kind: input, shape index: {}]   ;;  %s3810_s11 = inlined_call_operand.vmem [shape: f32[32,1], index: 11, kind: input, shape index: {}]   ;;  %s3811_s12 = inlined_call_operand.vmem [shape: f32[32,1], index: 12, kind: input, shape index: {}]   ;;  %s3812_s13 = inlined_call_operand.vmem [shape: f32[32,1], index: 13, kind: input, shape index: {}]   ;;  %s3813_s14 = inlined_call_operand.vmem [shape: f32[16,32], index: 14, kind: input, shape index: {}]   ;;  %s3814_s15 = inlined_call_operand.vmem [shape: f32[32,16], index: 15, kind: input, shape index: {}]   ;;  %s3815_s16 = inlined_call_operand.vmem [shape: f32[128,32], index: 16, kind: input, shape index: {}]   ;;  %s3816_s17 = inlined_call_operand.vmem [shape: f32[128,1], index: 17, kind: input, shape index: {}]   ;;  %s3817_s18 = inlined_call_operand.vmem [shape: f32[32,128], index: 18, kind: input, shape index: {}]   ;;  %s3818_s19 = inlined_call_operand.vmem [shape: f32[32,1], index: 19, kind: input, shape index: {}]   ;;  %s3819_s20 = inlined_call_operand.hbm [shape: f32[2,32,96], index: 20, kind: output, shape index: {}]  }
   0x1   :  { %3830 = sst [smem:[#allocation12_spill]] %s3799_s0 }
   0x2   :  { %3831 = sst [smem:[#allocation13_spill]] %s3800_s1 }
   0x3   :  { %3832 = sst [smem:[#allocation14_spill]] %s3801_s2 }
   0x4   :  { %3833 = sst [smem:[#allocation15_spill]] %s3802_s3 }
   0x5   :  { %3834 = sst [smem:[#allocation16_spill]] %s3803_s4 }
   0x6   :  { %3835 = sst [smem:[#allocation17_spill]] %s3804_s5 }
   0x7   :  { %25 = vsyncpa [#allocation4], 0 }
   0x8   :  { %27 = vsyncpa [#allocation4 + $0x1], 0  ;;  %s2911_s1 = smov 0   ;;  %s2913_s22 = smov 0  }
   0x9   :  { %s2915_s23 = smov 0   ;;  %s2917_s24 = smov 0  }
   0xa LB: > { %3836 = sst [smem:[#allocation6_spill]] %s2774_s1  ;;  %s2932_s2 = sadd.s32 4294967295, %s2786_s24   ;;  %s2786_s24 = sphi %s2917_s24, %s3853_s24   ;;  %s2782_s23 = sphi %s2915_s23, %s3855_s23   ;;  %s2778_s22 = sphi %s2913_s22, %s3857_s22   ;;  %s2774_s1 = sphi %s2911_s1, %s3856_s1  }
   0xb   : > { %3837 = sst [smem:[#allocation7_spill]] %s2782_s23  ;;  %s2418_s25 = sadd.s32 4294967294, %s2786_s24  }
   0xc   : > { %3838 = sst [smem:[#allocation8_spill]] %s2786_s24  ;;  %s2936_s3 = sadd.s32 1, %s2786_s24  }
   0xd   : > { %3839 = sst [smem:[#allocation9_spill]] %s2936_s3  ;;  %s470_s26 = sadd.s32 1, %s2782_s23 }
   0xe   : > { %s467_s27 = ssub.s32 %s2786_s24, %s2936_s3  ;;  %p480_p0 = scmp.ne.s32.totalorder %s2782_s23, %s2778_s22 }
   0xf   : > { %p468_p1 = scmp.eq.s32.totalorder %s467_s27, 0  ;;  %p481_p2 = scmp.eq.s32.totalorder %s2932_s2, 1 }
  0x10   : > { %p486_p3 = scmp.ne.s32.totalorder %s2778_s22, %s2774_s1  ;;  %p487_p4 = scmp.eq.s32.totalorder %s2418_s25, 1 }
  0x11   : > { %s2947_s28 = scalar_select %p468_p1, %s2782_s23, %s470_s26  }
  0x12   : > { %p2949_p5 = por %p481_p2, %p480_p0  ;;  %p2953_p6 = por %p487_p4, %p486_p3 }
  0x13   : > { %3840 = sst [smem:[#allocation10_spill]] %s2947_s28  ;;  %p2421_p7 = scmp.ge.s32.totalorder %s2786_s24, 1 }
  0x14   : > { %s3842_s29 = scalar_select %p2953_p6, 1, 0 }
  0x15   : > { %p573_p8 = scmp.lt.s32.totalorder %s2786_s24, 3 }
  0x16   : > { %3843 = sst [smem:[#allocation11_spill]] %s3842_s29 }
  0x17   : > { %p574_p9 = pnand %p2421_p7, %p573_p8 }
  0x18   : > { %s3844_s21 = sld [smem:[#allocation15_spill]] (!%p574_p9)  ;;  %s3845_s26 = sld [smem:[#allocation14_spill]] (!%p574_p9)  ;;  %v2788_v2 = vmov (!%p574_p9), 0   ;;  %v2789_v10 = vmov (!%p574_p9), 1   ;;  %v2790_v11 = vmov (!%p574_p9), 2   ;;  %v3019_v15 = vld [vmem:[%s3807_s8 + $0x8] sm:$0xff] (!%p574_p9) }
  0x19   : > { %577 = sbr.rel (%p574_p9) target bundleno = 1868 (0x74c), region = 100  ;;  %2660 = vset.pattern.permute.xlu1 (!%p574_p9), %v2788_v2  ;;  %2659 = vset.pattern.permute.xlu0 (!%p574_p9), %v2788_v2  ;;  %s3846_s30 = sld [smem:[#allocation16_spill]] (!%p574_p9)  ;;  %v3024_v16 = vld [vmem:[%s3807_s8] sm:$0xff] (!%p574_p9)  ;;  %v2791_v17 = vmov (!%p574_p9), 3   ;;  %v3042_v18 = vld [vmem:[%s3807_s8 + $0x10] sm:$0xff] (!%p574_p9)  ;;  %vm647_vm0 = vcmask (!%p574_p9), 785408  }
  0x1a   : > { %p634_p10 = scmp.lt.s32.totalorder (!%p574_p9), %s2932_s2, 1  ;;  %s3847_s23 = sld [smem:[#allocation12_spill]] (!%p574_p9)  ;;  %v3052_v21 = vld [vmem:[%s3807_s8 + $0x18] sm:$0xff] (!%p574_p9)  ;;  %v2792_v47 = vmov (!%p574_p9), 4   ;;  %vm749_vm1 = vcmask (!%p574_p9), 834560   ;;  %v2793_v61 = vmov (!%p574_p9), 0.0  }
  0x1b   : > { %750 = vst.msk [vmem:[#allocation2] sm:$0xff] (!%p574_p9), %vm749_vm1, %v2793_v61  ;;  %751 = vst.msk [vmem:[#allocation2 + $0x8] sm:$0xff] (!%p574_p9), %vm749_vm1, %v2793_v61  ;;  %vm770_vm2 = vcmask (!%p574_p9), 810008   ;;  %s3848_s5 = sld [smem:[#allocation17_spill]] (!%p574_p9)  ;;  %s2797_s3 = smov (!%p574_p9), 127   ;;  %vm1409_vm3 = vcmask (!%p574_p9), 261120  }
  0x1c   : > { %752 = vst.msk [vmem:[#allocation2 + $0x10] sm:$0xff] (!%p574_p9), %vm749_vm1, %v2793_v61  ;;  %753 = vst.msk [vmem:[#allocation2 + $0x18] sm:$0xff] (!%p574_p9), %vm749_vm1, %v2793_v61  ;;  %s2798_s1 = smov (!%p574_p9), 126   ;;  %s2801_s27 = smov (!%p574_p9), 123   ;;  %vm1584_vm4 = vcmask (!%p574_p9), 130048  }
  0x1d   : > { %s2452_s29 = sshll.u32 (!%p574_p9), %s2932_s2, 9 }
  0x1e   : > { %v721_v0 = vld [vmem:[%s3844_s21] sm:$0xff] (!%p574_p9)  ;;  %v722_v3 = vld [vmem:[%s3844_s21 + $0x8] sm:$0xff] (!%p574_p9)  ;;  %v696_v5 = vld [vmem:[%s3845_s26 + $0x18] sm:$0xff] (!%p574_p9) }
  0x1f   : > { %v693_v1 = vld [vmem:[%s3845_s26] sm:$0xff] (!%p574_p9)  ;;  %727 = vperm.xlu1 (!%p574_p9), %2660, %v721_v0   ;;  %v694_v4 = vld [vmem:[%s3845_s26 + $0x8] sm:$0xff] (!%p574_p9)  ;;  %v695_v6 = vld [vmem:[%s3845_s26 + $0x10] sm:$0xff] (!%p574_p9) }
  0x20   : > { %699 = vperm.xlu0 %2659, %v693_v1   ;;  %v724_v7 = vld [vmem:[%s3844_s21 + $0x18] sm:$0xff]  ;;  %v723_v8 = vld [vmem:[%s3844_s21 + $0x10] sm:$0xff]  ;;  %v2988_v9 = vld [vmem:[%s3846_s30 + $0x8] sm:$0xff]  ;;  %s3030_s24 = scalar_select %p634_p10, %s2932_s2, 1 }
  0x21   : > { %v2996_v12 = vld [vmem:[%s3846_s30] sm:$0xff]  ;;  %v3001_v13 = vld [vmem:[%s3846_s30 + $0x18] sm:$0xff]  ;;  %v3011_v14 = vld [vmem:[%s3846_s30 + $0x10] sm:$0xff]  ;;  %s2794_s21 = smov 3  }
  0x22   : > { %s2451_s0 = sshll.u32 %s3030_s24, 5 }
  0x23   : > { %732 = vperm.xlu1 %2660, %v722_v3   ;;  %s638_s28 = scalar_lea.vmem %s3847_s23, %s2451_s0  ;;  %s2800_s0 = smov 124  }
  0x24   : > { %704 = vperm.xlu0 %2659, %v694_v4   ;;  %v3044_v19 = vld [vmem:[%s638_s28] sm:$0xff]  ;;  %v3046_v20 = vld [vmem:[%s638_s28 + $0x8] sm:$0xff]  ;;  %v3062_v26 = vld [vmem:[%s638_s28 + $0x10] sm:$0xff] }
  0x25   : > { %v648_v22 = vsel %vm647_vm0, %v3044_v19, 0.0  ;;  %v649_v23 = vsel %vm647_vm0, %v3046_v20, 0.0  ;;  %v661_v24 = vmul.f32 %v3044_v19, %v3044_v19  ;;  %v662_v25 = vmul.f32 %v3046_v20, %v3046_v20  ;;  %v3071_v32 = vld [vmem:[%s638_s28 + $0x18] sm:$0xff] }
  0x26   : > { %v650_v27 = vadd.f32 %v649_v23, %v648_v22  ;;  %v651_v28 = vsel %vm647_vm0, %v3062_v26, 0.0  ;;  %v663_v29 = vmul.f32 %v3062_v26, %v3062_v26  ;;  %v653_v35 = vsel %vm647_vm0, %v3071_v32, 0.0 }
  0x27   : > { %714 = vperm.xlu1 %2660, %v696_v5   ;;  %v665_v30 = vsel %vm647_vm0, %v661_v24, 0.0  ;;  %v666_v31 = vsel %vm647_vm0, %v662_v25, 0.0  ;;  %v664_v36 = vmul.f32 %v3071_v32, %v3071_v32 }
  0x28   : > { %709 = vperm.xlu0 %2659, %v695_v6   ;;  %v652_v33 = vadd.f32 %v651_v28, %v650_v27  ;;  %v667_v34 = vadd.f32 %v666_v31, %v665_v30  ;;  %v668_v37 = vsel %vm647_vm0, %v663_v29, 0.0 }
  0x29   : > { %v670_v40 = vsel %vm647_vm0, %v664_v36, 0.0 }
  0x2a   : > { %v654_v38 = vadd.f32 %v653_v35, %v652_v33  ;;  %v669_v39 = vadd.f32 %v668_v37, %v667_v34 }
  0x2b   : > { %742 = vperm.xlu1 %2660, %v724_v7  }
  0x2c   : > { %737 = vperm.xlu0 %2659, %v723_v8   ;;  %v655_v41 = vrot.slane %v654_v38, 4  ;;  %v671_v42 = vadd.f32 %v670_v40, %v669_v39 }
  0x2e   : > { %v656_v43 = vadd.f32 %v655_v41, %v654_v38  ;;  %v672_v44 = vrot.slane %v671_v42, 4 }
  0x2f   : > { %2661 = vset.pattern.permute.xlu1 %v2789_v10 }
  0x30   : > { %2663 = vset.pattern.permute.xlu0 %v2790_v11  ;;  %1116 = vperm.xlu1 %2661, %v2988_v9   ;;  %v657_v45 = vrot.slane %v656_v43, 2  ;;  %v673_v46 = vadd.f32 %v672_v44, %v671_v42 }
  0x31   : > { %1156 = vperm.xlu0 %2663, %v2988_v9  }
  0x32   : > { %v658_v48 = vadd.f32 %v657_v45, %v656_v43  ;;  %v674_v49 = vrot.slane %v673_v46, 2 }
  0x34   : > { %2662 = vset.pattern.permute.xlu1 %v2790_v11  ;;  %v659_v50 = vrot.slane %v658_v48, 1  ;;  %v675_v51 = vadd.f32 %v674_v49, %v673_v46  ;;  %v2795_v46 = vmov 5  }
  0x35   : > { %1164 = vperm.xlu0 %2663, %v3001_v13   ;;  %1152 = vperm.xlu1 %2662, %v2996_v12  }
  0x36   : > { %v660_v52 = vadd.f32 %v659_v50, %v658_v48  ;;  %v676_v53 = vrot.slane %v675_v51, 1 }
  0x38   : > { %v677_v54 = vadd.f32 %v676_v53, %v675_v51  ;;  %v678_v55 = vmul.f32 0.03125, %v660_v52 }
  0x39   : > { %2666 = vset.pattern.permute.xlu0 %v2789_v10  ;;  %2664 = vset.pattern.permute.xlu1 %v2789_v10 }
  0x3a   : > { %1112 = vperm.xlu0 %2666, %v2996_v12   ;;  %1124 = vperm.xlu1 %2664, %v3001_v13   ;;  %v679_v56 = vmul.f32 0.03125, %v677_v54  ;;  %v680_v57 = vmul.f32 %v678_v55, %v678_v55  ;;  %v685_v62 = vsub.f32 %v3044_v19, %v678_v55  ;;  %v686_v1 = vsub.f32 %v3046_v20, %v678_v55 }
  0x3b   : > { %v687_v8 = vsub.f32 %v3062_v26, %v678_v55  ;;  %v688_v23 = vsub.f32 %v3071_v32, %v678_v55  ;;  %v2796_v54 = vmov 6  }
  0x3c   : > { %v681_v58 = vsub.f32 %v679_v56, %v680_v57 }
  0x3e   : > { %1120 = vperm.xlu0 %2666, %v3011_v14   ;;  %2665 = vset.pattern.permute.xlu1 %v2790_v11  ;;  %v682_v59 = vmax.f32 %v681_v58, 0.0 }
  0x3f   : > { %1160 = vperm.xlu1 %2665, %v3011_v14  }
  0x40   : > { %v683_v60 = vadd.f32 1e-05, %v682_v59 }
  0x42   : > { %816 = vperm.xlu0 %2666, %v3019_v15   ;;  %2686 = vrsqrt.f32 %v683_v60 }
  0x43   : > { %2667 = vset.pattern.permute.xlu1 %v2789_v10 }
  0x44   : > { %812 = vperm.xlu1 %2667, %v3024_v16  }
  0x46   : > { %2674 = vset.pattern.permute.xlu0 %v2791_v17 }
  0x48   : > { %2668 = vset.pattern.permute.xlu1 %v2790_v11 }
  0x49   : > { %852 = vperm.xlu1 %2668, %v3024_v16  }
  0x4c   : > { %v2687_v63 = vpop.eup %2686 }
  0x4d   : > { %856 = vperm.xlu1 %2668, %v3019_v15   ;;  %v689_v0 = vmul.f32 %v2687_v63, %v685_v62  ;;  %v690_v6 = vmul.f32 %v2687_v63, %v686_v1  ;;  %v691_v24 = vmul.f32 %v2687_v63, %v687_v8  ;;  %v692_v28 = vmul.f32 %v2687_v63, %v688_v23  ;;  %v1194_v63 = vld [vmem:[%s3848_s5 + $0x18] sm:$0xff]  ;;  %v1052_v1 = vld [vmem:[%s3808_s9 + $0x8] sm:$0xff] }
  0x51   : > { %2669 = vset.pattern.permute.xlu1 %v2789_v10 }
  0x52   : > { %820 = vperm.xlu1 %2669, %v3042_v18  }
  0x56   : > { %824 = vperm.xlu1 %2669, %v3052_v21  }
  0x5a   : > { %2670 = vset.pattern.permute.xlu1 %v2791_v17 }
  0x5b   : > { %892 = vperm.xlu1 %2670, %v3024_v16  }
  0x5f   : > { %896 = vperm.xlu1 %2670, %v3019_v15  }
  0x63   : > { %2671 = vset.pattern.permute.xlu1 %v2790_v11 }
  0x64   : > { %860 = vperm.xlu1 %2671, %v3042_v18  }
  0x68   : > { %864 = vperm.xlu1 %2671, %v3052_v21  }
  0x6c   : > { %2672 = vset.pattern.permute.xlu1 %v2792_v47 }
  0x6d   : > { %936 = vperm.xlu1 %2672, %v3019_v15  }
  0x71   : > { %2673 = vset.pattern.permute.xlu1 %v2791_v17 }
  0x9e   : > { %v728_v3 = vpop.permute.xlu1 %727 }
  0x9f   : > { %v700_v4 = vpop.permute.xlu0 %699 }
  0xa0   : > { %v717_v5 = vmul.f32 %v700_v4, %v689_v0 }
  0xa2   : > { %v3088_v7 = vadd.f32 %v728_v3, %v717_v5  ;;  %v733_v10 = vpop.permute.xlu1 %732  ;;  %v1304_v3 = vld [vmem:[%s3806_s7] sm:$0xff] }
  0xa3   : > { %v705_v11 = vpop.permute.xlu0 %704 }
  0xa4   : > { %v718_v17 = vmul.f32 %v705_v11, %v690_v6  ;;  %758 = vrot.lane.b32.xlu0 %v3088_v7, %s2794_s21  ;;  %v1243_v40 = vsel %vm647_vm0, %v3088_v7, 0.0  ;;  %v1278_v6 = vld [vmem:[%s3805_s6 + $0x10] sm:$0xff] }
  0xa6   : > { %v3092_v22 = vadd.f32 %v733_v10, %v718_v17  ;;  %v715_v25 = vpop.permute.xlu1 %714  ;;  %v1053_v10 = vld [vmem:[%s3808_s9 + $0x10] sm:$0xff] }
  0xa7   : > { %v710_v27 = vpop.permute.xlu0 %709  ;;  %v720_v34 = vmul.f32 %v715_v25, %v692_v28 }
  0xa8   : > { %760 = vrot.lane.b32.xlu1 %v3092_v22, %s2794_s21  ;;  %v719_v29 = vmul.f32 %v710_v27, %v691_v24  ;;  %v1246_v36 = vsel %vm647_vm0, %v3092_v22, 0.0 }
  0xaa   : > { %v743_v33 = vpop.permute.xlu1 %742 }
  0xab   : > { %v738_v30 = vpop.permute.xlu0 %737  ;;  %v3099_v35 = vadd.f32 %v743_v33, %v720_v34 }
  0xac   : > { %v3096_v31 = vadd.f32 %v738_v30, %v719_v29 }
  0xad   : > { %v1252_v50 = vsel %vm647_vm0, %v3099_v35, 0.0 }
  0xae   : > { %762 = vrot.lane.b32.xlu1 %v3096_v31, %s2794_s21  ;;  %v1249_v42 = vsel %vm647_vm0, %v3096_v31, 0.0 }
  0xaf   : > { %v3104_v37 = vpop.permute.xlu1 %1116 }
  0xb0   : > { %v3134_v51 = vpop.permute.xlu0 %1156 }
  0xb2   : > { %764 = vrot.lane.b32.xlu1 %v3099_v35, %s2794_s21  ;;  %s2799_s21 = smov 125  }
  0xb4   : > { %v3106_v38 = vpop.permute.xlu1 %1152  ;;  %v3141_v53 = vpop.permute.xlu0 %1164 }
  0xb9   : > { %v3108_v39 = vpop.permute.xlu1 %1124  ;;  %v3146_v56 = vpop.permute.xlu0 %1112 }
  0xbe   : > { %v3112_v41 = vpop.permute.xlu1 %1160 }
  0xc3   : > { %1247 = vadd.xlane.f32.xlu0 %v1246_v36  ;;  %v3118_v43 = vpop.permute.xlu1 %812 }
  0xc8   : > { %v3120_v44 = vpop.permute.xlu1 %852 }
  0xcc   : > { %v3122_v45 = vpop.permute.xlu1 %856 }
  0xd1   : > { %v3126_v48 = vpop.permute.xlu1 %820 }
  0xd5   : > { %v3129_v49 = vpop.permute.xlu1 %824 }
  0xd6   : > { %1244 = vadd.xlane.f32.xlu1 %v1243_v40 }
  0xd9   : > { %904 = vperm.xlu0 %2674, %v3052_v21  }
  0xda   : > { %1250 = vadd.xlane.f32.xlu1 %v1249_v42  ;;  %v3137_v52 = vpop.permute.xlu1 %892 }
  0xdd   : > { %2675 = vset.pattern.permute.xlu0 %v2792_v47 }
  0xde   : > { %v3143_v55 = vpop.permute.xlu1 %896 }
  0xe3   : > { %v3149_v57 = vpop.permute.xlu1 %860 }
  0xeb   : > { %900 = vperm.xlu1 %2673, %v3042_v18  }
  0xef   : > { %2676 = vset.pattern.permute.xlu1 %v2795_v46 }
  0xf0   : > { %972 = vperm.xlu1 %2676, %v3024_v16  }
  0xf4   : > { %976 = vperm.xlu1 %2676, %v3019_v15  }
  0xf8   : > { %1253 = vadd.xlane.f32.xlu0 %v1252_v50  ;;  %2677 = vset.pattern.permute.xlu1 %v2788_v2 }
  0xf9   : > { %1090 = vperm.xlu1 %2677, %v2988_v9   ;;  %v3151_v9 = vpop.permute.xlu0 %1120 }
  0xfd   : > { %2678 = vset.pattern.permute.xlu1 %v2792_v47  ;;  %v3155_v47 = vpop.permute.xlu1 %864  ;;  %v3158_v58 = vpop.permute.xlu0 %816 }
  0xfe   : > { %940 = vperm.xlu1 %2678, %v3042_v18  }
 0x101   : > { %v3162_v59 = vpop.permute.xlu1 %936 }
 0x102   : > { %2679 = vset.pattern.permute.xlu1 %v2796_v54 }
 0x103   : > { %1012 = vperm.xlu1 %2679, %v3024_v16  }
 0x107   : > { %1016 = vperm.xlu1 %2679, %v3019_v15  }
 0x10b   : > { %2682 = vset.pattern.permute.xlu1 %v2795_v46 }
 0x10c   : > { %984 = vperm.xlu1 %2682, %v3052_v21  }
 0x10e   : > { %932 = vperm.xlu0 %2675, %v3024_v16  }
 0x110   : > { %2683 = vset.pattern.permute.xlu1 %v2788_v2 }
 0x111   : > { %1095 = vperm.xlu1 %2683, %v3011_v14   ;;  %v1192_v14 = vld [vmem:[%s3848_s5 + $0x8] sm:$0xff] }
 0x112   : > { %944 = vperm.xlu0 %2675, %v3052_v21  }
 0x115   : > { %2684 = vset.pattern.permute.xlu1 %v2796_v54 }
 0x116   : > { %2680 = vset.pattern.permute.xlu0 %v2795_v46  ;;  %v759_v60 = vpop.permute.xlu0 %758  ;;  %1020 = vperm.xlu1 %2684, %v3042_v18  }
 0x117   : > { %771 = vst.msk [vmem:[#allocation2] sm:$0xff] %vm770_vm2, %v759_v60  ;;  %980 = vperm.xlu0 %2680, %v3042_v18  }
 0x11a   : > { %v761_v61 = vpop.permute.xlu1 %760  ;;  %1024 = vperm.xlu1 %2684, %v3052_v21  }
 0x11b   : > { %772 = vst.msk [vmem:[#allocation2 + $0x8] sm:$0xff] %vm770_vm2, %v761_v61  ;;  %2681 = vset.pattern.permute.xlu0 %v2788_v2 }
 0x11c   : > { %1085 = vperm.xlu0 %2681, %v2996_v12   ;;  %v1191_v12 = vld [vmem:[%s3848_s5] sm:$0xff] }
 0x11e   : > { %2685 = vset.pattern.permute.xlu1 %v2788_v2  ;;  %v1193_v2 = vld [vmem:[%s3848_s5 + $0x10] sm:$0xff]  ;;  %v3228_v17 = vld [vmem:[#allocation2] sm:$0xff] }
 0x11f   : > { %1202 = vperm.xlu1 %2685, %v1192_v14   ;;  %v1127_v24 = vmul.f32 %v3146_v56, %v3228_v17  ;;  %v1167_v27 = vmul.f32 %v3106_v38, %v3228_v17 }
 0x120   : > { %v763_v62 = vpop.permute.xlu1 %762  ;;  %1100 = vperm.xlu0 %2681, %v3001_v13   ;;  %v1277_v13 = vld [vmem:[%s3805_s6 + $0x8] sm:$0xff] }
 0x121   : > { %773 = vst.msk [vmem:[#allocation2 + $0x10] sm:$0xff] %vm770_vm2, %v763_v62 }
 0x122   : > { %v3212_v4 = vld [vmem:[#allocation2 + $0x8] sm:$0xff] }
 0x123   : > { %1212 = vperm.xlu1 %2685, %v1194_v63   ;;  %v1128_v5 = vmul.f32 %v3104_v37, %v3212_v4  ;;  %v1168_v8 = vmul.f32 %v3134_v51, %v3212_v4  ;;  %v828_v29 = vmul.f32 %v3158_v58, %v3212_v4  ;;  %v868_v33 = vmul.f32 %v3122_v45, %v3212_v4 }
 0x124   : > { %v765_v0 = vpop.permute.xlu1 %764  ;;  %1197 = vperm.xlu0 %2681, %v1191_v12   ;;  %v827_v37 = vmul.f32 %v3118_v43, %v3228_v17  ;;  %v908_v38 = vmul.f32 %v3143_v55, %v3212_v4  ;;  %v948_v43 = vmul.f32 %v3162_v59, %v3212_v4  ;;  %v907_v45 = vmul.f32 %v3137_v52, %v3228_v17  ;;  %v1054_v55 = vld [vmem:[%s3808_s9 + $0x18] sm:$0xff] }
 0x125   : > { %774 = vst.msk [vmem:[#allocation2 + $0x18] sm:$0xff] %vm770_vm2, %v765_v0 }
 0x127   : > { %790 = vperm.xlu1 %2685, %v3019_v15   ;;  %v1276_v15 = vld [vmem:[%s3805_s6] sm:$0xff] }
 0x128   : > { %1207 = vperm.xlu0 %2681, %v1193_v2   ;;  %v3241_v28 = vld [vmem:[#allocation2 + $0x10] sm:$0xff] }
 0x129   : > { %v1129_v30 = vmul.f32 %v3151_v9, %v3241_v28  ;;  %v1169_v34 = vmul.f32 %v3112_v41, %v3241_v28  ;;  %v829_v42 = vmul.f32 %v3126_v48, %v3241_v28  ;;  %v869_v48 = vmul.f32 %v3149_v57, %v3241_v28  ;;  %v1307_v57 = vld [vmem:[%s3806_s7 + $0x18] sm:$0xff] }
 0x12b   : > { %800 = vperm.xlu1 %2685, %v3052_v21   ;;  %v1051_v21 = vld [vmem:[%s3808_s9] sm:$0xff] }
 0x12c   : > { %785 = vperm.xlu0 %2681, %v3024_v16   ;;  %v1305_v16 = vld [vmem:[%s3806_s7 + $0x8] sm:$0xff]  ;;  %v3225_v11 = vld [vmem:[#allocation2 + $0x18] sm:$0xff] }
 0x12d   : > { %v1130_v23 = vmul.f32 %v3108_v39, %v3225_v11  ;;  %v1170_v25 = vmul.f32 %v3141_v53, %v3225_v11  ;;  %v830_v36 = vmul.f32 %v3129_v49, %v3225_v11  ;;  %v867_v39 = vmul.f32 %v3120_v44, %v3228_v17 }
 0x12e   : > { %v870_v40 = vmul.f32 %v3155_v47, %v3225_v11 }
 0x12f   : > { %1287 = vperm.xlu1 %2685, %v1277_v13   ;;  %v1240_v13 = vld [vmem:[%s3809_s10 + $0x8] sm:$0xff] }
 0x130   : > { %795 = vperm.xlu0 %2681, %v3042_v18   ;;  %v1279_v18 = vld [vmem:[%s3805_s6 + $0x18] sm:$0xff] }
 0x133   : > { %1062 = vperm.xlu1 %2685, %v1052_v1  }
 0x134   : > { %1282 = vperm.xlu0 %2681, %v1276_v15  }
 0x137   : > { %1315 = vperm.xlu1 %2685, %v1305_v16  }
 0x138   : > { %1057 = vperm.xlu0 %2681, %v1051_v21  }
 0x13b   : > { %1297 = vperm.xlu1 %2685, %v1279_v18  }
 0x13c   : > { %1310 = vperm.xlu0 %2681, %v1304_v3  }
 0x13f   : > { %1137 = vrot.lane.b32.xlu1 %v1128_v5, %s2797_s3  ;;  %v1265_v5 = vld [vmem:[%s3810_s11 + $0x8] sm:$0xff] }
 0x140   : > { %1292 = vperm.xlu0 %2681, %v1278_v6   ;;  %v1242_v6 = vld [vmem:[%s3809_s10 + $0x18] sm:$0xff] }
 0x143   : > { %1177 = vrot.lane.b32.xlu1 %v1168_v8, %s2798_s1 }
 0x144   : > { %1067 = vperm.xlu0 %2681, %v1053_v10   ;;  %v1306_v10 = vld [vmem:[%s3806_s7 + $0x10] sm:$0xff] }
 0x147   : > { %1141 = vrot.lane.b32.xlu1 %v1130_v23, %s2797_s3 }
 0x148   : > { %1135 = vrot.lane.b32.xlu0 %v1127_v24, %s2797_s3 }
 0x14b   : > { %1181 = vrot.lane.b32.xlu1 %v1170_v25, %s2798_s1 }
 0x14c   : > { %1175 = vrot.lane.b32.xlu0 %v1167_v27, %s2798_s1  ;;  %v1267_v27 = vld [vmem:[%s3810_s11 + $0x18] sm:$0xff] }
 0x14f   : > { %837 = vrot.lane.b32.xlu1 %v828_v29, %s2797_s3 }
 0x150   : > { %1139 = vrot.lane.b32.xlu0 %v1129_v30, %s2797_s3  ;;  %v1248_v41 = vpop.xlane.xlu0 %1247 }
 0x151   : > { %v1257_v12 = vmul.f32 0.010416667, %v1248_v41 }
 0x153   : > { %877 = vrot.lane.b32.xlu1 %v868_v33, %s2798_s1  ;;  %v1261_v15 = vmul.f32 %v1257_v12, %v1240_v13 }
 0x154   : > { %1179 = vrot.lane.b32.xlu0 %v1169_v34, %s2798_s1 }
 0x155   : > { %v1269_v23 = vadd.f32 %v1265_v5, %v1261_v15 }
 0x157   : > { %841 = vrot.lane.b32.xlu1 %v830_v36, %s2797_s3  ;;  %v1273_v30 = vmax.f32 %v1269_v23, 0.0 }
 0x158   : > { %835 = vrot.lane.b32.xlu0 %v827_v37, %s2797_s3  ;;  %v905_v44 = vpop.permute.xlu0 %904 }
 0x159   : > { %v910_v49 = vmul.f32 %v905_v44, %v3225_v11 }
 0x15b   : > { %917 = vrot.lane.b32.xlu1 %v908_v38, %s2799_s21  ;;  %v1239_v38 = vld [vmem:[%s3809_s10] sm:$0xff] }
 0x15c   : > { %875 = vrot.lane.b32.xlu0 %v867_v39, %s2798_s1 }
 0x15f   : > { %881 = vrot.lane.b32.xlu1 %v870_v40, %s2798_s1 }
 0x160   : > { %839 = vrot.lane.b32.xlu0 %v829_v42, %s2797_s3 }
 0x163   : > { %957 = vrot.lane.b32.xlu1 %v948_v43, %s2800_s0  ;;  %v1245_v46 = vpop.xlane.xlu1 %1244 }
 0x164   : > { %915 = vrot.lane.b32.xlu0 %v907_v45, %s2799_s21  ;;  %v1256_v33 = vmul.f32 0.010416667, %v1245_v46  ;;  %v1241_v45 = vld [vmem:[%s3809_s10 + $0x10] sm:$0xff] }
 0x166   : > { %v1260_v40 = vmul.f32 %v1256_v33, %v1239_v38 }
 0x167   : > { %921 = vrot.lane.b32.xlu1 %v910_v49, %s2799_s21  ;;  %v1251_v50 = vpop.xlane.xlu1 %1250  ;;  %v1264_v49 = vld [vmem:[%s3810_s11] sm:$0xff] }
 0x168   : > { %879 = vrot.lane.b32.xlu0 %v869_v48, %s2798_s1  ;;  %v1258_v41 = vmul.f32 0.010416667, %v1251_v50 }
 0x16a   : > { %v1262_v48 = vmul.f32 %v1258_v41, %v1241_v45 }
 0x16b   : > { %v901_v51 = vpop.permute.xlu1 %900 }
 0x16c   : > { %v909_v0 = vmul.f32 %v901_v51, %v3241_v28 }
 0x16f   : > { %v973_v53 = vpop.permute.xlu1 %972 }
 0x170   : > { %v987_v16 = vmul.f32 %v973_v53, %v3228_v17 }
 0x173   : > { %v977_v54 = vpop.permute.xlu1 %976 }
 0x174   : > { %v988_v52 = vmul.f32 %v977_v54, %v3212_v4  ;;  %v1268_v54 = vadd.f32 %v1264_v49, %v1260_v40 }
 0x176   : > { %997 = vrot.lane.b32.xlu1 %v988_v52, %s2801_s27 }
 0x178   : > { %v3290_v56 = vpop.permute.xlu1 %1090 }
 0x179   : > { %v1104_v5 = vmul.f32 %v3290_v56, %v3212_v4 }
 0x17a   : > { %1072 = vperm.xlu1 %2685, %v1054_v55   ;;  %v1266_v55 = vld [vmem:[%s3810_s11 + $0x10] sm:$0xff] }
 0x17d   : > { %v941_v9 = vpop.permute.xlu1 %940 }
 0x17e   : > { %1325 = vperm.xlu1 %2685, %v1307_v57   ;;  %v949_v34 = vmul.f32 %v941_v9, %v3241_v28  ;;  %v1272_v9 = vmax.f32 %v1268_v54, 0.0 }
 0x182   : > { %v1013_v47 = vpop.permute.xlu1 %1012 }
 0x183   : > { %v1027_v42 = vmul.f32 %v1013_v47, %v3228_v17  ;;  %v1270_v47 = vadd.f32 %v1266_v55, %v1262_v48 }
 0x185   : > { %v1254_v59 = vpop.xlane.xlu0 %1253 }
 0x186   : > { %v1017_v58 = vpop.permute.xlu1 %1016  ;;  %v1259_v21 = vmul.f32 0.010416667, %v1254_v59 }
 0x187   : > { %v1028_v18 = vmul.f32 %v1017_v58, %v3212_v4 }
 0x188   : > { %v1263_v24 = vmul.f32 %v1259_v21, %v1242_v6 }
 0x18a   : > { %v1271_v36 = vadd.f32 %v1267_v27, %v1263_v24 }
 0x18b   : > { %v985_v60 = vpop.permute.xlu1 %984 }
 0x18c   : > { %v990_v25 = vmul.f32 %v985_v60, %v3225_v11  ;;  %v1275_v43 = vmax.f32 %v1271_v36, 0.0  ;;  %v1274_v60 = vmax.f32 %v1270_v47, 0.0 }
 0x18d   : > { %v933_v61 = vpop.permute.xlu0 %932 }
 0x18e   : > { %v947_v14 = vmul.f32 %v933_v61, %v3228_v17 }
 0x190   : > { %955 = vrot.lane.b32.xlu0 %v947_v14, %s2800_s0  ;;  %v3297_v62 = vpop.permute.xlu1 %1095 }
 0x191   : > { %v945_v63 = vpop.permute.xlu0 %944 }
 0x192   : > { %v950_v2 = vmul.f32 %v945_v63, %v3225_v11 }
 0x194   : > { %919 = vrot.lane.b32.xlu0 %v909_v0, %s2799_s21  ;;  %961 = vrot.lane.b32.xlu1 %v950_v2, %s2800_s0  ;;  %s2802_s21 = smov 122  }
 0x195   : > { %v1021_v1 = vpop.permute.xlu1 %1020 }
 0x196   : > { %v981_v3 = vpop.permute.xlu0 %980  ;;  %v1029_v14 = vmul.f32 %v1021_v1, %v3241_v28 }
 0x197   : > { %v989_v51 = vmul.f32 %v981_v3, %v3241_v28 }
 0x198   : > { %995 = vrot.lane.b32.xlu0 %v987_v16, %s2801_s27  ;;  %1037 = vrot.lane.b32.xlu1 %v1028_v18, %s2802_s21 }
 0x199   : > { %v1025_v8 = vpop.permute.xlu1 %1024 }
 0x19a   : > { %v1030_v50 = vmul.f32 %v1025_v8, %v3225_v11 }
 0x19b   : > { %v3323_v29 = vpop.permute.xlu0 %1085 }
 0x19c   : > { %1320 = vperm.xlu0 %2681, %v1306_v10   ;;  %1001 = vrot.lane.b32.xlu1 %v990_v25, %s2801_s27 }
 0x19e   : > { %v1203_v37 = vpop.permute.xlu1 %1202 }
 0x19f   : > { %v1101_v39 = vpop.permute.xlu0 %1100 }
 0x1a0   : > { %959 = vrot.lane.b32.xlu0 %v949_v34, %s2800_s0  ;;  %1339 = vperm.xlu1 %2685, %v1273_v30   ;;  %v1106_v30 = vmul.f32 %v1101_v39, %v3225_v11  ;;  %v1103_v34 = vmul.f32 %v3323_v29, %v3228_v17  ;;  %s3750_s0 = scalar_lea.hbm %s3819_s20, %s2452_s29 }
 0x1a2   : > { %v1213_v44 = vpop.permute.xlu1 %1212 }
 0x1a3   : > { %v1198_v46 = vpop.permute.xlu0 %1197 }
 0x1a4   : > { %1035 = vrot.lane.b32.xlu0 %v1027_v42, %s2802_s21  ;;  %1349 = vperm.xlu1 %2685, %v1275_v43  }
 0x1a6   : > { %v3341_v53 = vpop.permute.xlu1 %790 }
 0x1a7   : > { %v1208_v52 = vpop.permute.xlu0 %1207 }
 0x1a8   : > { %999 = vrot.lane.b32.xlu0 %v989_v51, %s2801_s27  ;;  %1041 = vrot.lane.b32.xlu1 %v1030_v50, %s2802_s21 }
 0x1aa   : > { %v3348_v57 = vpop.permute.xlu1 %800 }
 0x1ab   : > { %v3350_v58 = vpop.permute.xlu0 %785 }
 0x1ac   : > { %1334 = vperm.xlu0 %2681, %v1272_v9  }
 0x1ae   : > { %v1288_v59 = vpop.permute.xlu1 %1287 }
 0x1af   : > { %v3352_v61 = vpop.permute.xlu0 %795  ;;  %v1301_v0 = vmul.f32 %v1288_v59, %v3092_v22 }
 0x1b0   : > { %1344 = vperm.xlu0 %2681, %v1274_v60  }
 0x1b2   : > { %v3355_v63 = vpop.permute.xlu1 %1062 }
 0x1b3   : > { %v1283_v12 = vpop.permute.xlu0 %1282 }
 0x1b4   : > { %1039 = vrot.lane.b32.xlu0 %v1029_v14, %s2802_s21  ;;  %v1300_v16 = vmul.f32 %v1283_v12, %v3088_v7  ;;  %s3849_s21 = sld [smem:[#allocation13_spill]] }
 0x1b6   : > { %v1316_v2 = vpop.permute.xlu1 %1315 }
 0x1b7   : > { %v3359_v13 = vadd.f32 %v1316_v2, %v1301_v0  ;;  %v3361_v15 = vpop.permute.xlu0 %1057 }
 0x1ba   : > { %v3364_v21 = vpop.permute.xlu1 %1297  ;;  %s641_s3 = scalar_lea.vmem %s3849_s21, %s3030_s24  ;;  %s631_s21 = sand.u32 1, %s2778_s22  }
 0x1bb   : > { %v1311_v18 = vpop.permute.xlu0 %1310  ;;  %s3758_s2 = scalar_lea.sflag [#allocation4], %s631_s21 }
 0x1bc   : > { %v3366_v3 = vadd.f32 %v1311_v18, %v1300_v16 }
 0x1be   : > { %v1138_v1 = vpop.permute.xlu1 %1137 }
 0x1bf   : > { %v3370_v6 = vpop.permute.xlu0 %1292  ;;  %v1148_v8 = vadd.f32 %v1138_v1, %v1104_v5 }
 0x1c2   : > { %v1178_v10 = vpop.permute.xlu1 %1177 }
 0x1c3   : > { %v1188_v23 = vadd.f32 %v1178_v10, %v1148_v8  ;;  %v3372_v24 = vpop.permute.xlu0 %1067 }
 0x1c5   : > { %v1216_v25 = vadd.f32 %v1203_v37, %v1188_v23  ;;  %v1105_v37 = vmul.f32 %v3297_v62, %v3241_v28 }
 0x1c6   : > { %v1142_v27 = vpop.permute.xlu1 %1141 }
 0x1c7   : > { %v1136_v33 = vpop.permute.xlu0 %1135  ;;  %1225 = vrot.lane.b32.xlu1 %v1216_v25, %s2798_s1  ;;  %v1150_v36 = vadd.f32 %v1142_v27, %v1106_v30  ;;  %v804_v30 = vmul.f32 %v3341_v53, %v3212_v4 }
 0x1c8   : > { %v1147_v38 = vadd.f32 %v1136_v33, %v1103_v34 }
 0x1ca   : > { %v1182_v56 = vpop.permute.xlu1 %1181 }
 0x1cb   : > { %v1190_v40 = vadd.f32 %v1182_v56, %v1150_v36  ;;  %v1176_v41 = vpop.permute.xlu0 %1175 }
 0x1cc   : > { %v1187_v42 = vadd.f32 %v1176_v41, %v1147_v38  ;;  %v806_v41 = vmul.f32 %v3348_v57, %v3225_v11 }
 0x1cd   : > { %v1218_v43 = vadd.f32 %v1213_v44, %v1190_v40 }
 0x1ce   : > { %v1215_v45 = vadd.f32 %v1198_v46, %v1187_v42  ;;  %v838_v50 = vpop.permute.xlu1 %837 }
 0x1cf   : > { %v1140_v49 = vpop.permute.xlu0 %1139  ;;  %1229 = vrot.lane.b32.xlu1 %v1218_v43, %s2798_s1  ;;  %v848_v34 = vadd.f32 %v838_v50, %v804_v30  ;;  %v803_v43 = vmul.f32 %v3350_v58, %v3228_v17  ;;  %v805_v17 = vmul.f32 %v3352_v61, %v3241_v28 }
 0x1d0   : > { %1223 = vrot.lane.b32.xlu0 %v1215_v45, %s2798_s1  ;;  %v1149_v39 = vadd.f32 %v1140_v49, %v1105_v37 }
 0x1d2   : > { %v878_v54 = vpop.permute.xlu1 %877 }
 0x1d3   : > { %v1180_v48 = vpop.permute.xlu0 %1179  ;;  %v888_v36 = vadd.f32 %v878_v54, %v848_v34 }
 0x1d4   : > { %v1189_v51 = vadd.f32 %v1180_v48, %v1149_v39 }
 0x1d6   : > { %v1217_v29 = vadd.f32 %v1208_v52, %v1189_v51  ;;  %v842_v55 = vpop.permute.xlu1 %841 }
 0x1d7   : > { %v836_v9 = vpop.permute.xlu0 %835  ;;  %v850_v45 = vadd.f32 %v842_v55, %v806_v41  ;;  %v2425_v55 = vld [vmem:[%s641_s3] ss:$0 sm:$0xff]  ;;  %s2422_s3 = sshll.u32 %s631_s21, 5 }
 0x1d8   : > { %1227 = vrot.lane.b32.xlu0 %v1217_v29, %s2798_s1  ;;  %v847_v39 = vadd.f32 %v836_v9, %v803_v43  ;;  %s633_s24 = scalar_lea.vmem [#allocation3], %s2422_s3  ;;  %s2803_s1 = smov [#allocation3]  }
 0x1d9   : > { %s2347_s5 = sshll.u32 %s633_s24, 4  ;;  %s2728_s27 = sshll.u32 %s2803_s1, 4  ;;  %s3752_s5 = int_to_ptr.vmem [resolvable:$true] %s2347_s5  ;;  %s2729_s27 = int_to_ptr.vmem [resolvable:$false] %s2728_s27 }
 0x1da   : > { %v918_v44 = vpop.permute.xlu1 %917  ;;  %s2724_s28 = scalar_lea.vmem %s3752_s5, 512  ;;  %s2730_s3 = scalar_lea.vmem %s2729_s27, 1024 }
 0x1db   : > { %v876_v46 = vpop.permute.xlu0 %875  ;;  %v928_v56 = vadd.f32 %v918_v44, %v888_v36  ;;  %p2725_p11 = scmp.ne.s32.totalorder %s3752_s5, %s2724_s28  ;;  %p2731_p0 = scmp.lt.s32.totalorder %s3752_s5, %s2729_s27 }
 0x1dc   : > { %v887_v53 = vadd.f32 %v876_v46, %v847_v39  ;;  %p2732_p1 = scmp.lt.s32.totalorder %s2730_s3, %s2724_s28 }
 0x1dd   : > { %p2726_p12 = pnand %p2725_p11, %p2949_p5 }
 0x1de   : > { %v882_v47 = vpop.permute.xlu1 %881  ;;  %p2733_p2 = por %p2732_p1, %p2731_p0 }
 0x1df   : > { %v840_v59 = vpop.permute.xlu0 %839  ;;  %v890_v48 = vadd.f32 %v882_v47, %v850_v45  ;;  %p2727_p13 = pneg %p2726_p12 }
 0x1e1   : > { %p2734_p3 = pnand %p2733_p2, %p2727_p13 }
 0x1e2   : > { %v958_v60 = vpop.permute.xlu1 %957 }
 0x1e3   : > { %v916_v14 = vpop.permute.xlu0 %915  ;;  %v968_v42 = vadd.f32 %v958_v60, %v928_v56  ;;  %v849_v60 = vadd.f32 %v840_v59, %v805_v17 }
 0x1e4   : > { %v927_v50 = vadd.f32 %v916_v14, %v887_v53 }
 0x1e6   : > { %v922_v12 = vpop.permute.xlu1 %921 }
 0x1e7   : > { %v880_v62 = vpop.permute.xlu0 %879  ;;  %v930_v29 = vadd.f32 %v922_v12, %v890_v48 }
 0x1ea   : > { %v998_v0 = vpop.permute.xlu1 %997 }
 0x1eb   : > { %v1008_v49 = vadd.f32 %v998_v0, %v968_v42 }
 0x1f9   : > { %v1073_v16 = vpop.permute.xlu1 %1072 }
 0x1fd   : > { %v1326_v1 = vpop.permute.xlu1 %1325 }
 0x202   : > { %v956_v2 = vpop.permute.xlu0 %955 }
 0x203   : > { %v967_v58 = vadd.f32 %v956_v2, %v927_v50 }
 0x206   : > { %v920_v18 = vpop.permute.xlu0 %919  ;;  %v962_v5 = vpop.permute.xlu1 %961 }
 0x207   : > { %v970_v54 = vadd.f32 %v962_v5, %v930_v29  ;;  %v889_v5 = vadd.f32 %v880_v62, %v849_v60 }
 0x209   : > { %v929_v61 = vadd.f32 %v920_v18, %v889_v5 }
 0x20a   : > { %v996_v52 = vpop.permute.xlu0 %995  ;;  %v1038_v10 = vpop.permute.xlu1 %1037 }
 0x20b   : > { %v1048_v4 = vadd.f32 %v1038_v10, %v1008_v49  ;;  %v1007_v12 = vadd.f32 %v996_v52, %v967_v58  ;;  %v1372_v10 = vmul.f32 %v2425_v55, %v3046_v20 }
 0x20d   : > { %v1076_v57 = vadd.f32 %v3355_v63, %v1048_v4  ;;  %v1303_v63 = vmul.f32 %v3364_v21, %v3099_v35 }
 0x20e   : > { %v1002_v25 = vpop.permute.xlu1 %1001 }
 0x20f   : > { %v1010_v44 = vadd.f32 %v1002_v25, %v970_v54  ;;  %v1331_v2 = vadd.f32 %v1326_v1, %v1303_v63  ;;  %v1371_v1 = vmul.f32 %v2425_v55, %v3044_v19  ;;  %v1824_v54 = vld [vmem:[%s3812_s13 + $0x8] sm:$0xff] }
 0x21b   : > { %v3383_v8 = vpop.permute.xlu0 %1320 }
 0x21f   : > { %v960_v23 = vpop.permute.xlu0 %959  ;;  %v1340_v33 = vpop.permute.xlu1 %1339 }
 0x220   : > { %v1353_v46 = vmul.f32 %v1340_v33, %v3359_v13  ;;  %v969_v33 = vadd.f32 %v960_v23, %v929_v61  ;;  %v1302_v23 = vmul.f32 %v3370_v6, %v3096_v31 }
 0x223   : > { %v1036_v27 = vpop.permute.xlu0 %1035  ;;  %v1350_v40 = vpop.permute.xlu1 %1349 }
 0x224   : > { %v1047_v30 = vadd.f32 %v1036_v27, %v1007_v12  ;;  %v1355_v36 = vmul.f32 %v1350_v40, %v1331_v2  ;;  %v1408_v12 = vld [vmem:[%s3813_s14 + $0x8] sm:$0xff] }
 0x226   : > { %v1075_v52 = vadd.f32 %v3361_v15, %v1047_v30  ;;  %v1374_v15 = vmul.f32 %v2425_v55, %v3071_v32  ;;  %v1373_v32 = vmul.f32 %v2425_v55, %v3062_v26  ;;  %v1580_v30 = vld [vmem:[%s3814_s15] sm:$0xff] }
 0x227   : > { %v1000_v38 = vpop.permute.xlu0 %999  ;;  %v1042_v51 = vpop.permute.xlu1 %1041 }
 0x228   : > { %v1050_v0 = vadd.f32 %v1042_v51, %v1010_v44  ;;  %v1009_v27 = vadd.f32 %v1000_v38, %v969_v33  ;;  %v1330_v38 = vadd.f32 %v3383_v8, %v1302_v23  ;;  %v1581_v33 = vld [vmem:[%s3814_s15 + $0x8] sm:$0xff] }
 0x22a   : > { %v1078_v13 = vadd.f32 %v1073_v16, %v1050_v0 }
 0x22b   : > { %v1335_v37 = vpop.permute.xlu0 %1334 }
 0x22c   : > { %v1352_v21 = vmul.f32 %v1335_v37, %v3366_v3 }
 0x22f   : > { %v1345_v11 = vpop.permute.xlu0 %1344 }
 0x230   : > { %v1354_v49 = vmul.f32 %v1345_v11, %v1330_v38  ;;  %v1407_v11 = vld [vmem:[%s3813_s14] sm:$0xff] }
 0x231   : > { %2505 = vmatprep.mubr.msk.f32.mxu0 %vm1409_vm3, %v1407_v11  ;;  %2516 = vmatprep.mubr.msk.f32.mxu1 %vm1409_vm3, %v1407_v11  ;;  %v1880_v11 = vld [vmem:[%s3816_s17 + $0x18] sm:$0xff] }
 0x233   : > { %v1040_v34 = vpop.permute.xlu0 %1039 }
 0x234   : > { %v1049_v18 = vadd.f32 %v1040_v34, %v1009_v27 }
 0x236   : > { %v1077_v3 = vadd.f32 %v3372_v24, %v1049_v18 }
 0x239   : > { %v1226_v9 = vpop.permute.xlu1 %1225 }
 0x23a   : > { %v1236_v47 = vmul.f32 %v1226_v9, %v1076_v57  ;;  %v1823_v57 = vld [vmem:[%s3812_s13] sm:$0xff] }
 0x23c   : > { %v1357_v14 = vadd.f32 %v1353_v46, %v1236_v47 }
 0x23e   : > { %v1361_v28 = vadd.f32 %v1357_v14, %v3092_v22 }
 0x240   : > { %v3403_v25 = vadd.f32 %v1372_v10, %v1361_v28 }
 0x241   : > { %v1230_v59 = vpop.permute.xlu1 %1229 }
 0x242   : > { %v1238_v20 = vmul.f32 %v1230_v59, %v1078_v13  ;;  %v1224_v56 = vpop.permute.xlu0 %1223  ;;  %v1382_v62 = vsel %vm647_vm0, %v3403_v25, 0.0 }
 0x243   : > { %v1235_v41 = vmul.f32 %v1224_v56, %v1075_v52  ;;  %1383 = vadd.xlane.f32.xlu1 %v1382_v62 }
 0x244   : > { %v1359_v22 = vadd.f32 %v1355_v36, %v1238_v20  ;;  %v1582_v36 = vld [vmem:[%s3814_s15 + $0x10] sm:$0xff] }
 0x245   : > { %v1356_v16 = vadd.f32 %v1352_v21, %v1235_v41  ;;  %v1583_v21 = vld [vmem:[%s3814_s15 + $0x18] sm:$0xff] }
 0x246   : > { %v1363_v40 = vadd.f32 %v1359_v22, %v3099_v35 }
 0x247   : > { %v1360_v42 = vadd.f32 %v1356_v16, %v3088_v7 }
 0x248   : > { %v3419_v37 = vadd.f32 %v1374_v15, %v1363_v40 }
 0x249   : > { %v3416_v43 = vadd.f32 %v1371_v1, %v1360_v42 }
 0x24a   : > { %v1228_v45 = vpop.permute.xlu0 %1227  ;;  %v1388_v8 = vsel %vm647_vm0, %v3419_v37, 0.0  ;;  %v1394_v29 = vmul.f32 %v3419_v37, %v3419_v37 }
 0x24b   : > { %v1237_v19 = vmul.f32 %v1228_v45, %v1077_v3  ;;  %v1379_v6 = vsel %vm647_vm0, %v3416_v43, 0.0  ;;  %v1391_v24 = vmul.f32 %v3416_v43, %v3416_v43 }
 0x24c   : > { %1380 = vadd.xlane.f32.xlu0 %v1379_v6  ;;  %v1404_v50 = vsel %vm647_vm0, %v1394_v29, 0.0  ;;  %v1877_v29 = vld [vmem:[%s3816_s17] sm:$0xff] }
 0x24d   : > { %v1358_v35 = vadd.f32 %v1354_v49, %v1237_v19  ;;  %v1395_v4 = vsel %vm647_vm0, %v1391_v24, 0.0  ;;  %v1792_v49 = vld [vmem:[%s3811_s12 + $0x8] sm:$0xff]  ;;  %v1794_v24 = vld [vmem:[%s3811_s12 + $0x18] sm:$0xff] }
 0x24f   : > { %v1362_v7 = vadd.f32 %v1358_v35, %v3096_v31  ;;  %v1392_v31 = vmul.f32 %v3403_v25, %v3403_v25  ;;  %v1791_v35 = vld [vmem:[%s3811_s12] sm:$0xff] }
 0x250   : > { %1389 = vadd.xlane.f32.xlu0 %v1388_v8 }
 0x251   : > { %v3429_v39 = vadd.f32 %v1373_v32, %v1362_v7  ;;  %v1398_v51 = vsel %vm647_vm0, %v1392_v31, 0.0  ;;  %v1793_v7 = vld [vmem:[%s3811_s12 + $0x10] sm:$0xff] }
 0x253   : > { %v1385_v48 = vsel %vm647_vm0, %v3429_v39, 0.0  ;;  %v1393_v26 = vmul.f32 %v3429_v39, %v3429_v39 }
 0x254   : > { %1386 = vadd.xlane.f32.xlu1 %v1385_v48  ;;  %1396 = vadd.xlane.f32.xlu0 %v1395_v4 }
 0x255   : > { %v1401_v53 = vsel %vm647_vm0, %v1393_v26, 0.0 }
 0x258   : > { %1402 = vadd.xlane.f32.xlu1 %v1401_v53  ;;  %1399 = vadd.xlane.f32.xlu0 %v1398_v51  ;;  %v1825_v53 = vld [vmem:[%s3812_s13 + $0x10] sm:$0xff]  ;;  %v1826_v51 = vld [vmem:[%s3812_s13 + $0x18] sm:$0xff] }
 0x25c   : > { %1405 = vadd.xlane.f32.xlu0 %v1404_v50  ;;  %v1878_v50 = vld [vmem:[%s3816_s17 + $0x8] sm:$0xff] }
 0x269   : > { %1834 = vperm.xlu1 %2685, %v1824_v54   ;;  %v1879_v54 = vld [vmem:[%s3816_s17 + $0x10] sm:$0xff] }
 0x272   : > { %1829 = vperm.xlu0 %2681, %v1823_v57   ;;  %v1851_v57 = vld [vmem:[%s3815_s16] sm:$0xff] }
 0x2d0   : > { %v1384_v17 = vpop.xlane.xlu1 %1383 }
 0x2d9   : > { %v1381_v58 = vpop.xlane.xlu0 %1380 }
 0x2da   : > { %v2579_v55 = vpack.c.bf16 %v1384_v17, %v1381_v58  ;;  %v1852_v17 = vld [vmem:[%s3815_s16 + $0x8] sm:$0xff]  ;;  %v1881_v58 = vld [vmem:[%s3816_s17 + $0x20] sm:$0xff] }
 0x2dc   : > { %2580 = vmatprep.subr.bf16.mxu0 %v2579_v55 }
 0x2dd   : > { %v1390_v9 = vpop.xlane.xlu0 %1389  ;;  %2582 = vmatpush3.bf16.msra.mxu0 %v2579_v55  ;;  %v1867_v55 = vpack.c.bf16 %v1852_v17, %v1851_v57  ;;  %v1864_v57 = vld [vmem:[%s3815_s16 + $0x68] sm:$0xff] }
 0x2e1   : > { %v1397_v44 = vpop.xlane.xlu0 %1396  ;;  %v1387_v46 = vpop.xlane.xlu1 %1386 }
 0x2e2   : > { %v2583_v47 = vpack.c.bf16 %v1390_v9, %v1387_v46  ;;  %v1882_v9 = vld [vmem:[%s3816_s17 + $0x28] sm:$0xff]  ;;  %v1884_v46 = vld [vmem:[%s3816_s17 + $0x38] sm:$0xff] }
 0x2e4   : > { %2584 = vmatprep.subr.bf16.mxu0 %v2583_v47 }
 0x2e5   : > { %v1400_v60 = vpop.xlane.xlu0 %1399  ;;  %2586 = vmatpush3.bf16.msra.mxu0 %v2583_v47  ;;  %v1403_v10 = vpop.xlane.xlu1 %1402  ;;  %v1885_v47 = vld [vmem:[%s3816_s17 + $0x40] sm:$0xff] }
 0x2e6   : > { %v2587_v0 = vpack.c.bf16 %v1400_v60, %v1397_v44  ;;  %v1883_v44 = vld [vmem:[%s3816_s17 + $0x30] sm:$0xff]  ;;  %v1886_v60 = vld [vmem:[%s3816_s17 + $0x48] sm:$0xff] }
 0x2e8   : > { %2506 = vmatmul.mubr.msk.f32.vlgmr.msra.gmra.mrb[0].mxu0 %vm1409_vm3, %v1408_v12  ;;  %2588 = vmatprep.subr.bf16.mxu1 %v2587_v0 }
 0x2e9   : > { %2590 = vmatpush3.bf16.msra.mxu1 %v2587_v0  ;;  %v1406_v14 = vpop.xlane.xlu0 %1405  ;;  %2523 = vmatprep.mubr.msk.f32.mxu0 %vm1584_vm4, %v1580_v30  ;;  %v1888_v0 = vld [vmem:[%s3816_s17 + $0x58] sm:$0xff] }
 0x2ea   : > { %v2591_v5 = vpack.c.bf16 %v1406_v14, %v1403_v10  ;;  %v1889_v10 = vld [vmem:[%s3816_s17 + $0x60] sm:$0xff]  ;;  %v1890_v14 = vld [vmem:[%s3816_s17 + $0x68] sm:$0xff] }
 0x2ec   : > { %2592 = vmatprep.subr.bf16.mxu1 %v2591_v5 }
 0x2ed   : > { %2594 = vmatpush3.bf16.msra.mxu1 %v2591_v5  ;;  %v1891_v5 = vld [vmem:[%s3816_s17 + $0x70] sm:$0xff] }
 0x2f0   : > { %2517 = vmatmul.mubr.msk.f32.vlgmr.msra.gmra.mrb[0].mxu1 %vm1409_vm3, %v1408_v12  ;;  %v1887_v12 = vld [vmem:[%s3816_s17 + $0x50] sm:$0xff] }
 0x2f1   : > { %2533 = vmatprep.mubr.msk.f32.mxu1 %vm1584_vm4, %v1580_v30  ;;  %v1892_v30 = vld [vmem:[%s3816_s17 + $0x78] sm:$0xff] }
 0x3bb   : > { %v2507_v63 = vpop.f32.mrb[0].mxu0 }
 0x3bc   : > { %v1492_v34 = vmul.f32 0.0052083335, %v2507_v63  ;;  %v1482_v28 = vpop.f32.mrb[1].mxu0  ;;  %v2252_v63 = vld [vmem:[%s3818_s19] sm:$0xff] }
 0x3bd   : > { %v1491_v61 = vmul.f32 0.0052083335, %v1482_v28  ;;  %v2254_v28 = vld [vmem:[%s3818_s19 + $0x10] sm:$0xff] }
 0x3be   : > { %v1571_v13 = vmul.f32 %v1492_v34, %v1492_v34 }
 0x3bf   : > { %v2595_v2 = vpack.c.bf16 %v1492_v34, %v1491_v61  ;;  %v1570_v59 = vmul.f32 %v1491_v61, %v1491_v61  ;;  %v2253_v34 = vld [vmem:[%s3818_s19 + $0x8] sm:$0xff]  ;;  %v2255_v61 = vld [vmem:[%s3818_s19 + $0x18] sm:$0xff] }
 0x3c1   : > { %2596 = vmatprep.subr.bf16.mxu0 %v2595_v2 }
 0x3c2   : > { %2598 = vmatpush3.bf16.msra.mxu0 %v2595_v2  ;;  %v1835_v2 = vpop.permute.xlu1 %1834 }
 0x3c3   : > { %v2518_v52 = vpop.f32.mrb[0].mxu1 }
 0x3c4   : > { %v1569_v20 = vmul.f32 0.0052083335, %v2518_v52  ;;  %v1559_v56 = vpop.f32.mrb[1].mxu1 }
 0x3c5   : > { %v1568_v62 = vmul.f32 0.0052083335, %v1559_v56  ;;  %2524 = vmatmul.mubr.msk.f32.vlgmr.msra.gmra.mrb[2].mxu0 %vm1584_vm4, %v1581_v33 }
 0x3c6   : > { %v1573_v27 = vsub.f32 %v1569_v20, %v1571_v13  ;;  %2526 = vmatprep.mubr.msk.f32.mxu0 %vm1584_vm4, %v1582_v36 }
 0x3c7   : > { %v1572_v41 = vsub.f32 %v1568_v62, %v1570_v59 }
 0x3c8   : > { %v1575_v22 = vmax.f32 %v1573_v27, 0.0 }
 0x3c9   : > { %v1574_v18 = vmax.f32 %v1572_v41, 0.0  ;;  %2527 = vmatmul.mubr.msk.f32.gmra.mrb[4].mxu0 %vm1584_vm4, %v1583_v21 }
 0x3ca   : > { %v1577_v1 = vadd.f32 1e-05, %v1575_v22  ;;  %2543 = vmatprep.mubr.msk.bf16.mxu0 %vm1409_vm3, %v1867_v55  ;;  %v1865_v55 = vld [vmem:[%s3815_s16 + $0x70] sm:$0xff] }
 0x3cb   : > { %v1576_v16 = vadd.f32 1e-05, %v1574_v18 }
 0x3cc   : > { %2688 = vrsqrt.f32 %v1577_v1 }
 0x3cd   : > { %2690 = vrsqrt.f32 %v1576_v16 }
 0x3d6   : > { %v2689_v23 = vpop.eup %2688 }
 0x3d7   : > { %v2691_v15 = vpop.eup %2690 }
 0x3d8   : > { %v2599_v40 = vpack.c.bf16 %v2689_v23, %v2691_v15 }
 0x3da   : > { %2600 = vmatprep.subr.bf16.mxu1 %v2599_v40 }
 0x3db   : > { %2602 = vmatpush3.bf16.msra.mxu1 %v2599_v40 }
 0x3de   : > { %2534 = vmatmul.mubr.msk.f32.vlgmr.msra.gmra.mrb[2].mxu1 %vm1584_vm4, %v1581_v33  ;;  %v1830_v33 = vpop.permute.xlu0 %1829 }
 0x3df   : > { %2536 = vmatprep.mubr.msk.f32.mxu1 %vm1584_vm4, %v1582_v36 }
 0x3e2   : > { %2537 = vmatmul.mubr.msk.f32.gmra.mrb[4].mxu1 %vm1584_vm4, %v1583_v21 }
 0x498   : > { %v2525_v42 = vpop.f32.mrb[2].mxu0 }
 0x499   : > { %1774 = vperm.xlu0 %2681, %v2525_v42   ;;  %v1663_v38 = vpop.f32.mrb[3].mxu0 }
 0x49a   : > { %1769 = vperm.xlu1 %2685, %v1663_v38  }
 0x49c   : > { %v2528_v3 = vpop.f32.mrb[4].mxu0 }
 0x49d   : > { %v1673_v45 = vpop.f32.mrb[5].mxu0 }
 0x49e   : > { %1784 = vperm.xlu1 %2685, %v2528_v3   ;;  %1779 = vperm.xlu0 %2681, %v1673_v45  }
 0x4b1   : > { %v2535_v19 = vpop.f32.mrb[2].mxu1 }
 0x4b2   : > { %v1796_v6 = vmul.f32 %v2535_v19, %v1792_v49  ;;  %v1748_v32 = vpop.f32.mrb[3].mxu1 }
 0x4b3   : > { %v1795_v48 = vmul.f32 %v1791_v35, %v1748_v32  ;;  %v1854_v32 = vld [vmem:[%s3815_s16 + $0x18] sm:$0xff] }
 0x4b4   : > { %1806 = vperm.xlu1 %2685, %v1796_v6   ;;  %v1853_v6 = vld [vmem:[%s3815_s16 + $0x10] sm:$0xff] }
 0x4b5   : > { %v2538_v8 = vpop.f32.mrb[4].mxu1 }
 0x4b6   : > { %v1758_v4 = vpop.f32.mrb[5].mxu1  ;;  %v1798_v31 = vmul.f32 %v2538_v8, %v1794_v24  ;;  %v1856_v8 = vld [vmem:[%s3815_s16 + $0x28] sm:$0xff]  ;;  %v1868_v24 = vpack.c.bf16 %v1854_v32, %v1853_v6 }
 0x4b7   : > { %v1797_v26 = vmul.f32 %v1793_v7, %v1758_v4  ;;  %v1855_v7 = vld [vmem:[%s3815_s16 + $0x20] sm:$0xff]  ;;  %v1857_v4 = vld [vmem:[%s3815_s16 + $0x30] sm:$0xff] }
 0x4b8   : > { %1801 = vperm.xlu1 %2685, %v1795_v48   ;;  %v1869_v48 = vpack.c.bf16 %v1856_v8, %v1855_v7 }
 0x4b9   : > { %1811 = vperm.xlu0 %2681, %v1797_v26   ;;  %v1858_v26 = vld [vmem:[%s3815_s16 + $0x38] sm:$0xff] }
 0x4bc   : > { %1816 = vperm.xlu1 %2685, %v1798_v31   ;;  %v1859_v31 = vld [vmem:[%s3815_s16 + $0x40] sm:$0xff] }
 0x4bd   : > { %1839 = vperm.xlu0 %2681, %v1825_v53   ;;  %v1860_v53 = vld [vmem:[%s3815_s16 + $0x48] sm:$0xff] }
 0x4c0   : > { %1844 = vperm.xlu1 %2685, %v1826_v51   ;;  %v1870_v51 = vpack.c.bf16 %v1858_v26, %v1857_v4 }
 0x4c1   : > { %1895 = vperm.xlu0 %2681, %v1877_v29   ;;  %v1871_v29 = vpack.c.bf16 %v1860_v53, %v1859_v31 }
 0x4c4   : > { %1900 = vperm.xlu1 %2685, %v1878_v50   ;;  %v1861_v50 = vld [vmem:[%s3815_s16 + $0x50] sm:$0xff] }
 0x4c5   : > { %1905 = vperm.xlu0 %2681, %v1879_v54   ;;  %v1862_v54 = vld [vmem:[%s3815_s16 + $0x58] sm:$0xff] }
 0x4c6   : > { %v1872_v17 = vpack.c.bf16 %v1862_v54, %v1861_v50 }
 0x4c8   : > { %1910 = vperm.xlu1 %2685, %v1880_v11   ;;  %v1863_v11 = vld [vmem:[%s3815_s16 + $0x60] sm:$0xff] }
 0x4c9   : > { %1915 = vperm.xlu0 %2681, %v1881_v58   ;;  %v1873_v58 = vpack.c.bf16 %v1864_v57, %v1863_v11 }
 0x4cc   : > { %1920 = vperm.xlu1 %2685, %v1882_v9   ;;  %v1866_v9 = vld [vmem:[%s3815_s16 + $0x78] sm:$0xff] }
 0x4cd   : > { %1925 = vperm.xlu0 %2681, %v1883_v44   ;;  %v1874_v44 = vpack.c.bf16 %v1866_v9, %v1865_v55 }
 0x4d0   : > { %1930 = vperm.xlu1 %2685, %v1884_v46   ;;  %v2238_v46 = vld [vmem:[%s3817_s18] sm:$0xff] }
 0x4d1   : > { %1935 = vperm.xlu0 %2681, %v1885_v47   ;;  %v2239_v47 = vld [vmem:[%s3817_s18 + $0x8] sm:$0xff] }
 0x4d4   : > { %1940 = vperm.xlu1 %2685, %v1886_v60   ;;  %v2242_v60 = vpack.c.bf16 %v2239_v47, %v2238_v46 }
 0x4d5   : > { %1945 = vperm.xlu0 %2681, %v1887_v12  }
 0x4d6   : > { %2575 = vmatprep.mubr.bf16.mxu1 %v2242_v60 }
 0x4d8   : > { %1950 = vperm.xlu1 %2685, %v1888_v0  }
 0x4d9   : > { %1955 = vperm.xlu0 %2681, %v1889_v10  }
 0x4dc   : > { %1960 = vperm.xlu1 %2685, %v1890_v14  }
 0x4dd   : > { %1965 = vperm.xlu0 %2681, %v1891_v5  }
 0x4e0   : > { %1970 = vperm.xlu1 %2685, %v1892_v30  }
 0x4e1   : > { %2258 = vperm.xlu0 %2681, %v2252_v63  }
 0x4e4   : > { %2263 = vperm.xlu1 %2685, %v2253_v34  }
 0x4e5   : > { %2268 = vperm.xlu0 %2681, %v2254_v28  }
 0x4e8   : > { %2273 = vperm.xlu1 %2685, %v2255_v61  }
 0x518   : > { %v1775_v59 = vpop.permute.xlu0 %1774 }
 0x519   : > { %v1770_v13 = vpop.permute.xlu1 %1769  ;;  %v1788_v20 = vsub.f32 %v3403_v25, %v1775_v59 }
 0x51a   : > { %v1787_v62 = vsub.f32 %v3416_v43, %v1770_v13 }
 0x51d   : > { %v1785_v52 = vpop.permute.xlu1 %1784  ;;  %v1780_v56 = vpop.permute.xlu0 %1779 }
 0x51e   : > { %v1789_v23 = vsub.f32 %v3429_v39, %v1780_v56  ;;  %v1790_v15 = vsub.f32 %v3419_v37, %v1785_v52 }
 0x533   : > { %v1807_v36 = vpop.permute.xlu1 %1806 }
 0x534   : > { %v1820_v27 = vmul.f32 %v1807_v36, %v1788_v20 }
 0x536   : > { %v1848_v18 = vadd.f32 %v1835_v2, %v1820_v27 }
 0x537   : > { %v1802_v21 = vpop.permute.xlu1 %1801 }
 0x538   : > { %v1819_v41 = vmul.f32 %v1802_v21, %v1787_v62  ;;  %v1812_v22 = vpop.permute.xlu0 %1811 }
 0x539   : > { %v1821_v38 = vmul.f32 %v1812_v22, %v1789_v23 }
 0x53a   : > { %v1847_v1 = vadd.f32 %v1830_v33, %v1819_v41 }
 0x53b   : > { %v1817_v16 = vpop.permute.xlu1 %1816 }
 0x53c   : > { %v1875_v40 = vpack.c.bf16 %v1848_v18, %v1847_v1  ;;  %v1840_v42 = vpop.permute.xlu0 %1839  ;;  %v1822_v3 = vmul.f32 %v1817_v16, %v1790_v15 }
 0x53d   : > { %v1849_v49 = vadd.f32 %v1840_v42, %v1821_v38 }
 0x53e   : > { %2539 = vmatprep.subr.bf16.mxu0 %v1875_v40 }
 0x53f   : > { %2540 = vmatpush3.bf16.msra.mxu0 %v1875_v40  ;;  %v1845_v45 = vpop.permute.xlu1 %1844 }
 0x540   : > { %v1850_v19 = vadd.f32 %v1845_v45, %v1822_v3  ;;  %v1896_v12 = vpop.permute.xlu0 %1895 }
 0x542   : > { %v1876_v35 = vpack.c.bf16 %v1850_v19, %v1849_v49 }
 0x543   : > { %v1901_v0 = vpop.permute.xlu1 %1900 }
 0x544   : > { %2541 = vmatprep.subr.bf16.mxu0 %v1876_v35  ;;  %v1906_v10 = vpop.permute.xlu0 %1905 }
 0x545   : > { %2542 = vmatpush3.bf16.msra.mxu0 %v1876_v35 }
 0x547   : > { %v1911_v14 = vpop.permute.xlu1 %1910 }
 0x548   : > { %2544 = vmatmul.mubr.msk.bf16.vlgmr.msra.gmra.mrb[8].mxu0 %vm1409_vm3, %v1868_v24  ;;  %v1916_v5 = vpop.permute.xlu0 %1915 }
 0x549   : > { %2547 = vmatprep.mubr.msk.bf16.mxu0 %vm1409_vm3, %v1869_v48 }
 0x54b   : > { %v1921_v30 = vpop.permute.xlu1 %1920 }
 0x54c   : > { %v1926_v63 = vpop.permute.xlu0 %1925 }
 0x54f   : > { %v1931_v2 = vpop.permute.xlu1 %1930 }
 0x550   : > { %2548 = vmatmul.mubr.msk.bf16.gmra.mrb[12].mxu0 %vm1409_vm3, %v1870_v51  ;;  %v1936_v21 = vpop.permute.xlu0 %1935 }
 0x551   : > { %2551 = vmatprep.mubr.msk.bf16.mxu0 %vm1409_vm3, %v1871_v29 }
 0x553   : > { %v1941_v16 = vpop.permute.xlu1 %1940 }
 0x554   : > { %v1946_v4 = vpop.permute.xlu0 %1945 }
 0x557   : > { %v1951_v11 = vpop.permute.xlu1 %1950 }
 0x558   : > { %2552 = vmatmul.mubr.msk.bf16.gmra.mrb[16].mxu0 %vm1409_vm3, %v1872_v17 }
 0x559   : > { %2555 = vmatprep.mubr.msk.bf16.mxu0 %vm1409_vm3, %v1873_v58 }
 0x560   : > { %2556 = vmatmul.mubr.msk.bf16.gmra.mrb[20].mxu0 %vm1409_vm3, %v1874_v44 }
 0x61b   : > { %v2545_v34 = vpop.f32.mrb[8].mxu0 }
 0x61c   : > { %v3623_v28 = vadd.f32 %v2545_v34, %v1906_v10  ;;  %v2031_v61 = vpop.f32.mrb[9].mxu0 }
 0x61d   : > { %v3625_v13 = vadd.f32 %v2031_v61, %v1896_v12  ;;  %v2546_v33 = vpop.f32.mrb[10].mxu0 }
 0x61e   : > { %v2096_v59 = vmul.f32 %v3623_v28, %v3623_v28  ;;  %v3629_v52 = vadd.f32 %v2546_v33, %v1911_v14  ;;  %v2034_v36 = vpop.f32.mrb[11].mxu0  ;;  %v1956_v14 = vpop.permute.xlu0 %1955 }
 0x61f   : > { %v2094_v20 = vmul.f32 %v3625_v13, %v3625_v13  ;;  %v3633_v56 = vadd.f32 %v2034_v36, %v1901_v0 }
 0x620   : > { %v2112_v62 = vmul.f32 %v2096_v59, %v3623_v28  ;;  %v2097_v27 = vmul.f32 %v3629_v52, %v3629_v52 }
 0x621   : > { %v2110_v41 = vmul.f32 %v2094_v20, %v3625_v13  ;;  %v2095_v22 = vmul.f32 %v3633_v56, %v3633_v56  ;;  %v1961_v20 = vpop.permute.xlu1 %1960 }
 0x622   : > { %v2128_v18 = vmul.f32 0.044715, %v2112_v62  ;;  %v2113_v1 = vmul.f32 %v2097_v27, %v3629_v52 }
 0x623   : > { %v2126_v23 = vmul.f32 0.044715, %v2110_v41  ;;  %v2111_v15 = vmul.f32 %v2095_v22, %v3633_v56  ;;  %v2549_v40 = vpop.f32.mrb[12].mxu0 }
 0x624   : > { %v2144_v42 = vadd.f32 %v2128_v18, %v3623_v28  ;;  %v2129_v38 = vmul.f32 0.044715, %v2113_v1  ;;  %v3644_v3 = vadd.f32 %v2549_v40, %v1926_v63  ;;  %v2047_v45 = vpop.f32.mrb[13].mxu0 }
 0x625   : > { %v2142_v49 = vadd.f32 %v2126_v23, %v3625_v13  ;;  %v2127_v19 = vmul.f32 0.044715, %v2111_v15  ;;  %v3647_v6 = vadd.f32 %v2047_v45, %v1916_v5  ;;  %v2550_v32 = vpop.f32.mrb[14].mxu0 }
 0x626   : > { %v2160_v35 = vmul.f32 0.7978846, %v2144_v42  ;;  %v2145_v7 = vadd.f32 %v2129_v38, %v3629_v52  ;;  %v2100_v8 = vmul.f32 %v3644_v3, %v3644_v3  ;;  %v3652_v24 = vadd.f32 %v2550_v32, %v1931_v2  ;;  %v2050_v48 = vpop.f32.mrb[15].mxu0 }
 0x627   : > { %v2158_v26 = vmul.f32 0.7978846, %v2142_v49  ;;  %v2143_v31 = vadd.f32 %v2127_v19, %v3633_v56  ;;  %v2098_v53 = vmul.f32 %v3647_v6, %v3647_v6  ;;  %v3657_v51 = vadd.f32 %v2050_v48, %v1921_v30  ;;  %v1966_v49 = vpop.permute.xlu0 %1965 }
 0x628   : > { %2692 = vtanh.f32 %v2160_v35  ;;  %v2161_v29 = vmul.f32 0.7978846, %v2145_v7  ;;  %v2116_v50 = vmul.f32 %v2100_v8, %v3644_v3  ;;  %v2101_v54 = vmul.f32 %v3652_v24, %v3652_v24 }
 0x629   : > { %2694 = vtanh.f32 %v2158_v26  ;;  %v2159_v57 = vmul.f32 0.7978846, %v2143_v31  ;;  %v2114_v17 = vmul.f32 %v2098_v53, %v3647_v6  ;;  %v2099_v58 = vmul.f32 %v3657_v51, %v3657_v51 }
 0x62a   : > { %2696 = vtanh.f32 %v2161_v29  ;;  %v2132_v55 = vmul.f32 0.044715, %v2116_v50  ;;  %v2117_v9 = vmul.f32 %v2101_v54, %v3652_v24  ;;  %v1971_v29 = vpop.permute.xlu1 %1970 }
 0x62b   : > { %v2130_v44 = vmul.f32 0.044715, %v2114_v17  ;;  %v2115_v46 = vmul.f32 %v2099_v58, %v3657_v51  ;;  %v2553_v47 = vpop.f32.mrb[16].mxu0  ;;  %2698 = vtanh.f32 %v2159_v57 }
 0x62c   : > { %v2148_v60 = vadd.f32 %v2132_v55, %v3644_v3  ;;  %v2133_v12 = vmul.f32 0.044715, %v2117_v9  ;;  %v3668_v0 = vadd.f32 %v2553_v47, %v1946_v4  ;;  %v2063_v10 = vpop.f32.mrb[17].mxu0 }
 0x62d   : > { %v2146_v5 = vadd.f32 %v2130_v44, %v3647_v6  ;;  %v2131_v30 = vmul.f32 0.044715, %v2115_v46  ;;  %v3671_v63 = vadd.f32 %v2063_v10, %v1936_v21  ;;  %v2554_v34 = vpop.f32.mrb[18].mxu0 }
 0x62e   : > { %v2164_v61 = vmul.f32 0.7978846, %v2148_v60  ;;  %v2149_v2 = vadd.f32 %v2133_v12, %v3652_v24  ;;  %v2104_v33 = vmul.f32 %v3668_v0, %v3668_v0  ;;  %v3676_v59 = vadd.f32 %v2554_v34, %v1951_v11  ;;  %v2066_v36 = vpop.f32.mrb[19].mxu0 }
 0x62f   : > { %v2162_v62 = vmul.f32 0.7978846, %v2146_v5  ;;  %v2147_v27 = vadd.f32 %v2131_v30, %v3657_v51  ;;  %v2102_v41 = vmul.f32 %v3671_v63, %v3671_v63  ;;  %v3681_v22 = vadd.f32 %v2066_v36, %v1941_v16 }
 0x630   : > { %2700 = vtanh.f32 %v2164_v61  ;;  %v2165_v21 = vmul.f32 0.7978846, %v2149_v2  ;;  %v2120_v18 = vmul.f32 %v2104_v33, %v3668_v0  ;;  %v2105_v1 = vmul.f32 %v3676_v59, %v3676_v59 }
 0x631   : > { %2702 = vtanh.f32 %v2162_v62  ;;  %v2163_v23 = vmul.f32 0.7978846, %v2147_v27  ;;  %v2118_v15 = vmul.f32 %v2102_v41, %v3671_v63  ;;  %v2103_v40 = vmul.f32 %v3681_v22, %v3681_v22 }
 0x632   : > { %v2693_v42 = vpop.eup %2692  ;;  %2704 = vtanh.f32 %v2165_v21  ;;  %v2136_v38 = vmul.f32 0.044715, %v2120_v18  ;;  %v2121_v16 = vmul.f32 %v2105_v1, %v3676_v59 }
 0x633   : > { %v2695_v45 = vpop.eup %2694  ;;  %2706 = vtanh.f32 %v2163_v23  ;;  %v2134_v19 = vmul.f32 0.044715, %v2118_v15  ;;  %v2119_v32 = vmul.f32 %v2103_v40, %v3681_v22  ;;  %v2557_v35 = vpop.f32.mrb[20].mxu0  ;;  %v2192_v7 = vadd.f32 1.0, %v2693_v42 }
 0x634   : > { %v2697_v8 = vpop.eup %2696  ;;  %v2152_v48 = vadd.f32 %v2136_v38, %v3668_v0  ;;  %v2137_v4 = vmul.f32 0.044715, %v2121_v16  ;;  %v3692_v26 = vadd.f32 %v2557_v35, %v1966_v49  ;;  %v2079_v31 = vpop.f32.mrb[21].mxu0  ;;  %v2190_v53 = vadd.f32 1.0, %v2695_v45 }
 0x635   : > { %v2150_v50 = vadd.f32 %v2134_v19, %v3671_v63  ;;  %v2135_v54 = vmul.f32 0.044715, %v2119_v32  ;;  %v3695_v11 = vadd.f32 %v2079_v31, %v1956_v14  ;;  %v2558_v57 = vpop.f32.mrb[22].mxu0  ;;  %v2193_v17 = vadd.f32 1.0, %v2697_v8  ;;  %v2699_v47 = vpop.eup %2698 }
 0x636   : > { %v2168_v58 = vmul.f32 0.7978846, %v2152_v48  ;;  %v2153_v55 = vadd.f32 %v2137_v4, %v3676_v59  ;;  %v2108_v9 = vmul.f32 %v3692_v26, %v3692_v26  ;;  %v3700_v44 = vadd.f32 %v2558_v57, %v1971_v29  ;;  %v2082_v46 = vpop.f32.mrb[23].mxu0 }
 0x637   : > { %v2166_v60 = vmul.f32 0.7978846, %v2150_v50  ;;  %v2151_v12 = vadd.f32 %v2135_v54, %v3681_v22  ;;  %v2106_v10 = vmul.f32 %v3695_v11, %v3695_v11  ;;  %v3705_v14 = vadd.f32 %v2082_v46, %v1961_v20 }
 0x638   : > { %2708 = vtanh.f32 %v2168_v58  ;;  %v2169_v5 = vmul.f32 0.7978846, %v2153_v55  ;;  %v2124_v30 = vmul.f32 %v2108_v9, %v3692_v26  ;;  %v2109_v34 = vmul.f32 %v3700_v44, %v3700_v44 }
 0x639   : > { %2710 = vtanh.f32 %v2166_v60  ;;  %v2167_v61 = vmul.f32 0.7978846, %v2151_v12  ;;  %v2122_v2 = vmul.f32 %v2106_v10, %v3695_v11  ;;  %v2107_v33 = vmul.f32 %v3705_v14, %v3705_v14 }
 0x63a   : > { %v2701_v36 = vpop.eup %2700  ;;  %2712 = vtanh.f32 %v2169_v5  ;;  %v2140_v62 = vmul.f32 0.044715, %v2124_v30  ;;  %v2125_v20 = vmul.f32 %v2109_v34, %v3700_v44  ;;  %v2191_v27 = vadd.f32 1.0, %v2699_v47 }
 0x63b   : > { %v2703_v41 = vpop.eup %2702  ;;  %2714 = vtanh.f32 %v2167_v61  ;;  %v2138_v21 = vmul.f32 0.044715, %v2122_v2  ;;  %v2123_v18 = vmul.f32 %v2107_v33, %v3705_v14  ;;  %v2206_v1 = vmul.f32 0.5, %v2190_v53 }
 0x63c   : > { %v2705_v23 = vpop.eup %2704  ;;  %v2156_v15 = vadd.f32 %v2140_v62, %v3692_v26  ;;  %v2141_v40 = vmul.f32 0.044715, %v2125_v20  ;;  %v2207_v42 = vmul.f32 0.5, %v2191_v27  ;;  %v2208_v38 = vmul.f32 0.5, %v2192_v7 }
 0x63d   : > { %v2707_v16 = vpop.eup %2706  ;;  %v2154_v45 = vadd.f32 %v2138_v21, %v3695_v11  ;;  %v2139_v49 = vmul.f32 0.044715, %v2123_v18  ;;  %v2222_v19 = vmul.f32 %v2206_v1, %v3625_v13  ;;  %v2209_v32 = vmul.f32 0.5, %v2193_v17 }
 0x63e   : > { %v2172_v35 = vmul.f32 0.7978846, %v2156_v15  ;;  %v2157_v8 = vadd.f32 %v2141_v40, %v3700_v44  ;;  %v2223_v48 = vmul.f32 %v2207_v42, %v3633_v56  ;;  %v2224_v4 = vmul.f32 %v2208_v38, %v3623_v28 }
 0x63f   : > { %v2170_v31 = vmul.f32 0.7978846, %v2154_v45  ;;  %v2155_v53 = vadd.f32 %v2139_v49, %v3705_v14  ;;  %v2225_v29 = vmul.f32 %v2209_v32, %v3629_v52  ;;  %v2194_v7 = vadd.f32 1.0, %v2703_v41 }
 0x640   : > { %2716 = vtanh.f32 %v2172_v35  ;;  %v2173_v50 = vmul.f32 0.7978846, %v2157_v8  ;;  %v2244_v54 = vpack.c.bf16 %v2223_v48, %v2222_v19  ;;  %v2195_v57 = vadd.f32 1.0, %v2707_v16 }
 0x641   : > { %2718 = vtanh.f32 %v2170_v31  ;;  %v2171_v13 = vmul.f32 0.7978846, %v2155_v53  ;;  %v2245_v17 = vpack.c.bf16 %v2225_v29, %v2224_v4  ;;  %v2210_v58 = vmul.f32 0.5, %v2194_v7  ;;  %v2240_v53 = vld [vmem:[%s3817_s18 + $0x10] sm:$0xff] }
 0x642   : > { %v2709_v55 = vpop.eup %2708  ;;  %2720 = vtanh.f32 %v2173_v50  ;;  %2559 = vmatprep.subr.bf16.mxu1 %v2244_v54  ;;  %v2211_v56 = vmul.f32 0.5, %v2195_v57  ;;  %v2196_v9 = vadd.f32 1.0, %v2701_v36  ;;  %v2197_v28 = vadd.f32 1.0, %v2705_v23 }
 0x643   : > { %v2711_v46 = vpop.eup %2710  ;;  %2722 = vtanh.f32 %v2171_v13  ;;  %2560 = vmatpush3.bf16.msra.mxu1 %v2244_v54  ;;  %v2226_v52 = vmul.f32 %v2210_v58, %v3647_v6  ;;  %v2200_v47 = vadd.f32 1.0, %v2709_v55 }
 0x644   : > { %v2713_v60 = vpop.eup %2712  ;;  %2561 = vmatprep.subr.bf16.mxu1 %v2245_v17  ;;  %v2227_v12 = vmul.f32 %v2211_v56, %v3657_v51  ;;  %v2212_v10 = vmul.f32 0.5, %v2196_v9  ;;  %v2213_v5 = vmul.f32 0.5, %v2197_v28  ;;  %v2198_v30 = vadd.f32 1.0, %v2711_v46 }
 0x645   : > { %v2715_v34 = vpop.eup %2714  ;;  %v2201_v61 = vadd.f32 1.0, %v2713_v60  ;;  %v2216_v2 = vmul.f32 0.5, %v2200_v47 }
 0x646   : > { %v2246_v33 = vpack.c.bf16 %v2227_v12, %v2226_v52  ;;  %v2228_v36 = vmul.f32 %v2212_v10, %v3644_v3  ;;  %v2229_v62 = vmul.f32 %v2213_v5, %v3652_v24  ;;  %v2199_v20 = vadd.f32 1.0, %v2715_v34 }
 0x647   : > { %2562 = vmatpush3.bf16.msra.mxu1 %v2245_v17  ;;  %v2214_v27 = vmul.f32 0.5, %v2198_v30  ;;  %v2217_v6 = vmul.f32 0.5, %v2201_v61  ;;  %v2232_v51 = vmul.f32 %v2216_v2, %v3668_v0 }
 0x648   : > { %2563 = vmatprep.subr.bf16.mxu1 %v2246_v33  ;;  %v2247_v41 = vpack.c.bf16 %v2229_v62, %v2228_v36  ;;  %v2215_v21 = vmul.f32 0.5, %v2199_v20 }
 0x649   : > { %v2233_v18 = vmul.f32 %v2217_v6, %v3676_v59  ;;  %v2230_v23 = vmul.f32 %v2214_v27, %v3671_v63 }
 0x64a   : > { %v2717_v1 = vpop.eup %2716  ;;  %v2231_v15 = vmul.f32 %v2215_v21, %v3681_v22 }
 0x64b   : > { %v2719_v40 = vpop.eup %2718  ;;  %2564 = vmatpush3.bf16.msra.mxu1 %v2246_v33  ;;  %v2249_v3 = vpack.c.bf16 %v2233_v18, %v2232_v51  ;;  %v2204_v24 = vadd.f32 1.0, %v2717_v1 }
 0x64c   : > { %v2721_v42 = vpop.eup %2720  ;;  %2565 = vmatprep.subr.bf16.mxu1 %v2247_v41  ;;  %v2248_v38 = vpack.c.bf16 %v2231_v15, %v2230_v23  ;;  %v2202_v16 = vadd.f32 1.0, %v2719_v40 }
 0x64d   : > { %v2723_v45 = vpop.eup %2722  ;;  %v2205_v49 = vadd.f32 1.0, %v2721_v42  ;;  %v2220_v19 = vmul.f32 0.5, %v2204_v24 }
 0x64e   : > { %v2203_v32 = vadd.f32 1.0, %v2723_v45  ;;  %v2218_v0 = vmul.f32 0.5, %v2202_v16 }
 0x64f   : > { %2566 = vmatpush3.bf16.msra.mxu1 %v2247_v41  ;;  %v2221_v59 = vmul.f32 0.5, %v2205_v49  ;;  %v2236_v63 = vmul.f32 %v2220_v19, %v3692_v26  ;;  %v2241_v26 = vld [vmem:[%s3817_s18 + $0x18] sm:$0xff] }
 0x650   : > { %2567 = vmatprep.subr.bf16.mxu1 %v2248_v38  ;;  %v2219_v35 = vmul.f32 0.5, %v2203_v32  ;;  %v2234_v8 = vmul.f32 %v2218_v0, %v3695_v11  ;;  %v2243_v11 = vpack.c.bf16 %v2241_v26, %v2240_v53 }
 0x651   : > { %v2237_v22 = vmul.f32 %v2221_v59, %v3700_v44  ;;  %v2259_v44 = vpop.permute.xlu0 %2258 }
 0x652   : > { %v2235_v48 = vmul.f32 %v2219_v35, %v3705_v14  ;;  %v2264_v14 = vpop.permute.xlu1 %2263 }
 0x653   : > { %2568 = vmatpush3.bf16.msra.mxu1 %v2248_v38  ;;  %v2251_v4 = vpack.c.bf16 %v2237_v22, %v2236_v63 }
 0x654   : > { %2569 = vmatprep.subr.bf16.mxu1 %v2249_v3  ;;  %v2250_v31 = vpack.c.bf16 %v2235_v48, %v2234_v8 }
 0x655   : > { %v2269_v29 = vpop.permute.xlu0 %2268 }
 0x656   : > { %v2274_v57 = vpop.permute.xlu1 %2273 }
 0x657   : > { %2570 = vmatpush3.bf16.msra.mxu1 %v2249_v3 }
 0x658   : > { %2571 = vmatprep.subr.bf16.mxu1 %v2250_v31 }
 0x65b   : > { %2572 = vmatpush3.bf16.msra.mxu1 %v2250_v31 }
 0x65c   : > { %2573 = vmatprep.subr.bf16.mxu1 %v2251_v4 }
 0x65f   : > { %2574 = vmatpush3.bf16.msra.mxu1 %v2251_v4 }
 0x662   : > { %2576 = vmatmul.mubr.bf16.vlgmr.msra.gmra.mrb[8].mxu1 %v2243_v11 }
 0x735   : > { %v2577_v7 = vpop.f32.mrb[8].mxu1 }
 0x736   : > { %v2319_v50 = vadd.f32 %v2577_v7, %v2269_v29  ;;  %v2310_v54 = vpop.f32.mrb[9].mxu1 }
 0x737   : > { %v2311_v13 = vadd.f32 %v2310_v54, %v2259_v44  ;;  %v2578_v17 = vpop.f32.mrb[10].mxu1 }
 0x738   : > { %v2327_v58 = vadd.f32 %v2319_v50, %v3429_v39  ;;  %v2322_v55 = vadd.f32 %v2578_v17, %v2274_v57  ;;  %v2313_v56 = vpop.f32.mrb[11].mxu1 }
 0x739   : > { %v2325_v9 = vadd.f32 %v2311_v13, %v3416_v43  ;;  %v2314_v28 = vadd.f32 %v2313_v56, %v2264_v14 }
 0x73a   : > { %2331 = vst.msk [vmem:[%s633_s24 + $0x10] sm:$0xff] %vm647_vm0, %v2327_v58  ;;  %v2328_v46 = vadd.f32 %v2322_v55, %v3419_v37 }
 0x73b   : > { %2329 = vst.msk [vmem:[%s633_s24] sm:$0xff] %vm647_vm0, %v2325_v9  ;;  %v2326_v39 = vadd.f32 %v2314_v28, %v3403_v25 }
 0x73c   : > { %2332 = vst.msk [vmem:[%s633_s24 + $0x18] sm:$0xff] %vm647_vm0, %v2328_v46 }
 0x73d   : > { %2330 = vst.msk [vmem:[%s633_s24 + $0x8] sm:$0xff] %vm647_vm0, %v2326_v39 }
 0x73e   : > { %2737 = shalt.err (!%p2734_p3)
}
 0x73f   : > { %s2738_s21 = scalar_lea.hbm %s3750_s0, 512  ;;  %s2742_s25 = scalar_lea.hbm %s3819_s20, 1024 }
 0x740   : > { %p2739_p4 = scmp.ne.s32.totalorder %s3750_s0, %s2738_s21  ;;  %p2743_p9 = scmp.lt.u32.totalorder %s3750_s0, %s3819_s20 }
 0x741   : > { %p2744_p10 = scmp.lt.u32.totalorder %s2742_s25, %s2738_s21  ;;  %p2746_p12 = scmp.lt.u32.totalorder %s2738_s21, %s3750_s0 }
 0x742   : > { %p2740_p7 = pnand %p2739_p4, %p2949_p5 }
 0x743   : > { %p2745_p11 = por %p2744_p10, %p2743_p9 }
 0x744   : > { %p2741_p8 = pneg %p2740_p7 }
 0x745   : > { %p2747_p13 = por %p2746_p12, %p2745_p11 }
 0x747   : > { %p2748_p0 = pnand %p2747_p13, %p2741_p8 }
 0x749   : > { %2751 = shalt.err (!%p2748_p0)
}
 0x74a   : > { %s2804_s28 = smov 128   ;;  %s2805_s27 = smov 8  }
 0x74b   : > { %2603 = dma.vmem_to_hbm [thread:$0]  (%p2949_p5), %s3752_s5, 512, %s3750_s0, %s3758_s2, %s2804_s28, %s2804_s28, %s2805_s27  }
 0x74c PF: > { %s3850_s3 = sld [smem:[#allocation8_spill]]  ;;  %s3851_s24 = sld [smem:[#allocation6_spill]] }
 0x752   : > { %p2609_p1 = scmp.ge.s32.totalorder %s3850_s3, 2  ;;  %s2362_s23 = sand.u32 1, %s3851_s24  }
 0x753   : > { %s2363_s21 = scalar_lea.sflag [#allocation4], %s2362_s23 }
 0x754   : > { %p2606_p2 = pnand %p2609_p1, %p2953_p6 }
 0x756   : > { %2769 = dma.done.wait (!%p2606_p2), %s2363_s21, 512  }
 0x757   : > { %2771 = vsyncadd (!%p2606_p2), %s2363_s21, 4294966784  ;;  %s3853_s24 = sld [smem:[#allocation9_spill]]  ;;  %s3854_s25 = sld [smem:[#allocation7_spill]] }
 0x758   : > { %s3855_s23 = sld [smem:[#allocation10_spill]]  ;;  %s3856_s1 = smov %s2778_s22 }
 0x75d   : > { %p30_p3 = scmp.ge.s32.totalorder %s3853_s24, 4   ;;  %s3857_s22 = smov %s3854_s25 }
 0x75f   :  { %32 = sbr.rel (!%p30_p3) target bundleno = 10 (0xa), region = 138 }
 0x766   :  { %2368 = vsyncpa [#allocation4], 1 }
 0x767   :  { %2370 = vsyncpa [#allocation4 + $0x1], 1 }

</bundles_post_ra>
